<compile_context>
chip_gen: v6e
topology: v6e:2x2x1
jax: 0.10.0
libtpu: 0.0.40
codegen_flags: <defaults>
</compile_context>

<pallas_src>
import jax
import jax.numpy as jnp
from jax import lax
from jax.experimental import pallas as pl
from jax.experimental.pallas import tpu as pltpu


def _round_up(x, m):
    return ((x + m - 1) // m) * m


# -----------------------------------------------------------------------------
# Path 1: table resident in VMEM, gather = batched one-hot matmul on the MXU.
# -----------------------------------------------------------------------------
def _onehot_gather_kernel(ids_ref, emb_ref, out_ref):
    ids = ids_ref[...]                                         # (TN, 1) int32
    tn = ids.shape[0]
    v = emb_ref.shape[0]
    col = lax.broadcasted_iota(jnp.int32, (tn, v), 1)          # (TN, V)
    onehot = (col == ids).astype(emb_ref.dtype)                # exact 0/1 rows
    out_ref[...] = jnp.dot(
        onehot, emb_ref[...],
        preferred_element_type=jnp.float32,
        precision=lax.Precision.HIGHEST,
    ).astype(out_ref.dtype)


def _lookup_onehot(emb, flat_ids, *, tn=256):
    n = flat_ids.shape[0]
    v, e = emb.shape
    tn = min(tn, _round_up(n, 8))
    n_pad = _round_up(n, tn)
    ids2d = jnp.pad(flat_ids, (0, n_pad - n)).reshape(n_pad, 1).astype(jnp.int32)

    out = pl.pallas_call(
        _onehot_gather_kernel,
        out_shape=jax.ShapeDtypeStruct((n_pad, e), emb.dtype),
        grid_spec=pltpu.PrefetchScalarGridSpec(
            num_scalar_prefetch=0,
            grid=(n_pad // tn,),
            in_specs=[
                pl.BlockSpec((tn, 1), lambda i: (i, 0)),                 # ids tile
                pl.BlockSpec(memory_space=pltpu.MemorySpace.VMEM),       # full table
            ],
            out_specs=pl.BlockSpec((tn, e), lambda i: (i, 0)),
        ),
        compiler_params=pltpu.CompilerParams(
            dimension_semantics=("parallel",)),
    )(ids2d, emb)
    return out[:n]


# -----------------------------------------------------------------------------
# Path 2: table stays in HBM; TN concurrent row DMAs per grid step.
# -----------------------------------------------------------------------------
def _make_row_gather_kernel(tn):
    def kernel(ids_ref, emb_hbm, out_ref, buf, sems):
        base = pl.program_id(0) * tn

        # Issue all TN row copies (HBM -> VMEM scratch); they run concurrently.
        def start(j, c):
            idx = ids_ref[base + j]
            pltpu.make_async_copy(
                emb_hbm.at[pl.ds(idx, 1), :],
                buf.at[pl.ds(j, 1), :],
                sems.at[j],
            ).start()
            return c
        lax.fori_loop(0, tn, start, 0)

        # Wait for all of them (src index is irrelevant for the wait).
        def wait(j, c):
            pltpu.make_async_copy(
                emb_hbm.at[pl.ds(0, 1), :],
                buf.at[pl.ds(j, 1), :],
                sems.at[j],
            ).wait()
            return c
        lax.fori_loop(0, tn, wait, 0)

        out_ref[...] = buf[...]
    return kernel


def _lookup_rowgather(emb, flat_ids, *, tn=64):
    n = flat_ids.shape[0]
    v, e = emb.shape
    tn = min(tn, _round_up(n, 8))
    n_pad = _round_up(n, tn)
    ids = jnp.pad(flat_ids, (0, n_pad - n)).astype(jnp.int32)   # pad with row 0

    out = pl.pallas_call(
        _make_row_gather_kernel(tn),
        out_shape=jax.ShapeDtypeStruct((n_pad, e), emb.dtype),
        grid_spec=pltpu.PrefetchScalarGridSpec(
            num_scalar_prefetch=1,                               # ids -> SMEM
            grid=(n_pad // tn,),
            in_specs=[pl.BlockSpec(memory_space=pl.ANY)],        # table stays in HBM
            out_specs=pl.BlockSpec((tn, e), lambda i, ids: (i, 0)),
            scratch_shapes=[
                pltpu.VMEM((tn, e), emb.dtype),
                pltpu.SemaphoreType.DMA((tn,)),
            ],
        ),
        compiler_params=pltpu.CompilerParams(
            dimension_semantics=("arbitrary",)),
    )(ids, emb)
    return out[:n]


# -----------------------------------------------------------------------------
# Wrapper == ItemEmbeddingLayer.forward
# -----------------------------------------------------------------------------
_ONEHOT_VMEM_BUDGET_BYTES = 8 << 20   # conservative vs. scoped-VMEM defaults


def item_embedding_forward(emb, item_id, *, method="auto"):
    """Pallas equivalent of  nn.Embedding(item_size, embd_dim)(item_id)."""
    ids_shape = item_id.shape
    flat_ids = item_id.reshape(-1).astype(jnp.int32)
    v, e = emb.shape
    if method == "auto":
        table_bytes = v * e * emb.dtype.itemsize
        onehot_blk_bytes = min(256, _round_up(flat_ids.shape[0], 8)) * v * emb.dtype.itemsize
        method = ("onehot"
                  if table_bytes + onehot_blk_bytes <= _ONEHOT_VMEM_BUDGET_BYTES
                  else "rowgather")
    if method == "onehot":
        out = _lookup_onehot(emb, flat_ids)
    elif method == "rowgather":
        out = _lookup_rowgather(emb, flat_ids)
    else:
        raise ValueError(f"unknown method: {method}")
    return out.reshape(ids_shape + (e,))


if __name__ == "__main__":
    key = jax.random.PRNGKey(0)
    item_size, embd_dim = 512, 128          # lane-dense embedding width
    batch, hist_len = 4, 8                  # item_id shaped like DIEN history ids

    kemb, kids = jax.random.split(key)
    emb = (0.1 * jax.random.normal(kemb, (item_size, embd_dim))).astype(jnp.float32)
    item_id = jax.random.randint(kids, (batch, hist_len), 0, item_size,
                                 dtype=jnp.int32)

    ref = emb[item_id]                      # plain-JAX reference gather

    # auto -> one-hot MXU path (table fits VMEM comfortably)
    out = item_embedding_forward(emb, item_id)
    jax.block_until_ready(out)
    assert out.shape == (batch, hist_len, embd_dim)
    assert bool(jnp.all(jnp.isfinite(out)))
    assert bool(jnp.allclose(out, ref, rtol=1e-5, atol=1e-5)), "onehot path mismatch"

    # large-table path (HBM-resident table, batched per-row DMA gather)
    out2 = item_embedding_forward(emb, item_id, method="rowgather")
    jax.block_until_ready(out2)
    assert bool(jnp.allclose(out2, ref)), "rowgather path mismatch"

    print("KERNEL_OK")
</pallas_src>

<mosaic_0001>
module attributes {stable_mosaic.version = 11 : i64} {
  func.func @_onehot_gather_kernel(%arg0: i32, %arg1: memref<32x1xi32, #tpu.memory_space<vmem>>, %arg2: memref<512x128xf32, #tpu.memory_space<vmem>>, %arg3: memref<32x128xf32, #tpu.memory_space<vmem>>) attributes {dimension_semantics = [#tpu.dimension_semantics<parallel>], iteration_bounds = array<i64: 1>, scalar_prefetch = 0 : i64, scratch_operands = 0 : i64, tpu.core_type = #tpu.core_type<tc>, window_params = [{transform_indices = @transform_0, window_bounds = array<i64: 32, 1>}, {pipeline_mode = #tpu.pipeline_mode<synchronous>, transform_indices = @transform_1, window_bounds = array<i64: 512, 128>}, {transform_indices = @transform_2, window_bounds = array<i64: 32, 128>}]} {
    %c0 = arith.constant 0 : index
    %c0_0 = arith.constant 0 : index
    %0 = vector.load %arg1[%c0, %c0_0] : memref<32x1xi32, #tpu.memory_space<vmem>>, vector<32x1xi32>
    %1 = tpu.iota {dimensions = array<i32: 1>} : vector<32x512xi32>
    %2 = vector.broadcast %0 : vector<32x1xi32> to vector<32x512xi32>
    %3 = arith.cmpi eq, %1, %2 : vector<32x512xi32>
    %4 = arith.extui %3 : vector<32x512xi1> to vector<32x512xi32>
    %5 = arith.sitofp %4 : vector<32x512xi32> to vector<32x512xf32>
    %c0_1 = arith.constant 0 : index
    %c0_2 = arith.constant 0 : index
    %6 = vector.load %arg2[%c0_1, %c0_2] : memref<512x128xf32, #tpu.memory_space<vmem>>, vector<512x128xf32>
    %cst = arith.constant dense<0.000000e+00> : vector<32x128xf32>
    %7 = tpu.matmul %5, %6, %cst {dimension_numbers = #tpu.dot_dimension_numbers<[1], [0], [0], [1], [0, 0, 1, 1], [], []>, precision = #tpu.contract_precision<fp32>} : vector<32x512xf32>, vector<512x128xf32>, vector<32x128xf32> -> vector<32x128xf32>
    %c0_3 = arith.constant 0 : index
    %c0_4 = arith.constant 0 : index
    %8 = vector.load %arg3[%c0_3, %c0_4] : memref<32x128xf32, #tpu.memory_space<vmem>>, vector<32x128xf32>
    tpu.vector_store %arg3[%c0_3, %c0_4], %7 {strides = array<i32>} : memref<32x128xf32, #tpu.memory_space<vmem>>, vector<32x128xf32>,
    return
  }
  func.func @transform_0(%arg0: i32) -> (i32, i32) {
    %c0_i32 = arith.constant 0 : i32
    %c0_i32_0 = arith.constant 0 : i32
    return %arg0, %c0_i32 : i32, i32
  }
  func.func @transform_1(%arg0: i32) -> (i32, i32) {
    %c0_i32 = arith.constant 0 : i32
    %c0_i32_0 = arith.constant 0 : i32
    %c0_i32_1 = arith.constant 0 : i32
    return %c0_i32, %c0_i32_0 : i32, i32
  }
  func.func @transform_2(%arg0: i32) -> (i32, i32) {
    %c0_i32 = arith.constant 0 : i32
    %c0_i32_0 = arith.constant 0 : i32
    return %arg0, %c0_i32 : i32, i32
  }
}

</mosaic_0001>

<bundles_post_ra>
// kernel: tpu_custom_call.1
= control target key start
LH: loop header
LB: loop body
LE: loop exit
PB: predicated region body
PF: predicated region fallthrough
CT: control target
= control target key end

     0   :  { %7 = vsyncpa [#allocation3], 0  ;;  %s4527_s0 = inlined_call_operand.vmem [shape: s32[32,1], index: 0, kind: input, shape index: {}]   ;;  %s4528_s1 = inlined_call_operand.hbm [shape: f32[512,128], index: 1, kind: input, shape index: {}]   ;;  %s4529_s2 = inlined_call_operand.hbm [shape: f32[32,128], index: 2, kind: output, shape index: {}]  }
   0x1   :  { %8 = vsyncpa [#allocation4], 0  ;;  %s2885_s9 = smov [#allocation2]  }
   0x2   :  { %s16_s10 = sshll.u32 %s2885_s9, 4  ;;  %s17_s10 = int_to_ptr.vmem [resolvable:$true] %s16_s10 }
   0x3   :  { %s2849_s11 = scalar_lea.vmem %s17_s10, 8192  ;;  %p2854_p1 = scmp.lt.s32.totalorder %s17_s10, %s17_s10 }
   0x4   :  { %p2850_p0 = scmp.ne.s32.totalorder %s17_s10, %s2849_s11  ;;  %p2855_p2 = scmp.lt.s32.totalorder %s2849_s11, %s2849_s11 }
   0x6   :  { %p2856_p3 = por %p2855_p2, %p2854_p1 }
   0x8   :  { %p2857_p4 = pnand %p2856_p3, %p2850_p0 }
   0xa   :  { %2860 = shalt.err (!%p2857_p4)
}
   0xb   :  { %s2886_s12 = smov 128   ;;  %s2887_s13 = smov 8  }
   0xc   :  { %22 = dma.hbm_to_vmem [thread:$0]  %s4528_s1, 8192, %s17_s10, [#allocation3], %s2886_s12, %s2886_s12, %s2887_s13  }
   0xd   :  { %2881 = dma.done.wait [#allocation3], 8192  }
   0xe   :  { %2882 = vsyncadd [#allocation3], 4294959104  ;;  %v2888_v0 = vmov 0   ;;  %v26_v1 = vld [vmem:[%s4527_s0] sm:$0xff]  ;;  %v27_v2 = vld [vmem:[%s4527_s0 + $0x8] sm:$0xff] }
   0xf   :  { %2839 = vset.pattern.permute.xlu0 %v2888_v0  ;;  %2840 = vset.pattern.permute.xlu1 %v2888_v0  ;;  %v28_v3 = vld [vmem:[%s4527_s0 + $0x10] sm:$0xff]  ;;  %v29_v4 = vld [vmem:[%s4527_s0 + $0x18] sm:$0xff]  ;;  %v124_v11 = vld [vmem:[#allocation2 + $0xe8] sm:$0xff]  ;;  %s2891_s0 = smov [#allocation5]  }
  0x10   :  { %36 = vperm.xlu0 %2839, %v26_v1   ;;  %42 = vperm.xlu1 %2840, %v28_v3   ;;  %v126_v5 = vld [vmem:[#allocation2 + $0xf8] sm:$0xff]  ;;  %v125_v9 = vld [vmem:[#allocation2 + $0xf0] sm:$0xff]  ;;  %v2933_v14 = vand.u32 4294901760, %v124_v11  ;;  %v108_v15 = vld [vmem:[#allocation2 + $0x68] sm:$0xff]  ;;  %s2228_s23 = sshll.u32 %s2891_s0, 4  ;;  %s2229_s23 = int_to_ptr.vmem [resolvable:$true] %s2228_s23 }
  0x11   :  { %v110_v6 = vld [vmem:[#allocation2 + $0x78] sm:$0xff]  ;;  %v2925_v7 = vand.u32 4294901760, %v126_v5  ;;  %v109_v10 = vld [vmem:[#allocation2 + $0x70] sm:$0xff]  ;;  %v2929_v12 = vand.u32 4294901760, %v125_v9  ;;  %v123_v16 = vld [vmem:[#allocation2 + $0xe0] sm:$0xff]  ;;  %v2941_v20 = vand.u32 4294901760, %v108_v15  ;;  %p2866_p6 = scmp.lt.s32.totalorder %s2229_s23, %s2229_s23 }
  0x12   :  { %v2927_v8 = vand.u32 4294901760, %v110_v6  ;;  %v2931_v13 = vand.u32 4294901760, %v109_v10  ;;  %v107_v17 = vld [vmem:[#allocation2 + $0x60] sm:$0xff]  ;;  %v2943_v21 = vand.u32 4294901760, %v123_v16  ;;  %v2953_v24 = vsub.f32 %v124_v11, %v2933_v14  ;;  %v122_v42 = vld [vmem:[#allocation2 + $0xd8] sm:$0xff]  ;;  %v121_v48 = vld [vmem:[#allocation2 + $0xd0] sm:$0xff] }
  0x13   :  { %v2936_v18 = vsub.f32 %v126_v5, %v2925_v7  ;;  %4697 = vst [vmem:[#allocation9_spill] sm:$0xff] %v2941_v20  ;;  %2304 = vmatprep.subr.mxu0 %v2925_v7  ;;  %v2947_v22 = vsub.f32 %v125_v9, %v2929_v12  ;;  %v2955_v25 = vand.u32 4294901760, %v107_v17  ;;  %v2960_v28 = vsub.f32 %v108_v15, %v2941_v20  ;;  %v106_v43 = vld [vmem:[#allocation2 + $0x58] sm:$0xff]  ;;  %v105_v49 = vld [vmem:[#allocation2 + $0x50] sm:$0xff]  ;;  %v120_v50 = vld [vmem:[#allocation2 + $0xc8] sm:$0xff]  ;;  %s2861_s24 = scalar_lea.vmem %s2229_s23, 512 }
  0x14   :  { %v2939_v19 = vsub.f32 %v110_v6, %v2927_v8  ;;  %4698 = vst [vmem:[#allocation10_spill] sm:$0xff] %v2943_v21  ;;  %39 = vperm.xlu0 %2839, %v27_v2   ;;  %45 = vperm.xlu1 %2840, %v29_v4   ;;  %v2950_v23 = vsub.f32 %v109_v10, %v2931_v13  ;;  %v4541_v32 = vand.u32 4294901760, %v2953_v24  ;;  %v104_v55 = vld [vmem:[#allocation2 + $0x48] sm:$0xff]  ;;  %v119_v56 = vld [vmem:[#allocation2 + $0xc0] sm:$0xff]  ;;  %v3004_v59 = vand.u32 4294901760, %v122_v42  ;;  %p2862_p5 = scmp.ne.s32.totalorder %s2229_s23, %s2861_s24  ;;  %p2867_p7 = scmp.lt.s32.totalorder %s2861_s24, %s2861_s24 }
  0x15   :  { %4696 = vst [vmem:[#allocation8_spill] sm:$0xff] %v2936_v18  ;;  %v4549_v26 = vand.u32 4294901760, %v2936_v18  ;;  %v2963_v29 = vsub.f32 %v123_v16, %v2943_v21  ;;  %2305 = vmatpush3.msra.mxu0 %v2927_v8  ;;  %v4545_v30 = vand.u32 4294901760, %v2947_v22  ;;  %v2970_v33 = vsub.f32 %v107_v17, %v2955_v25  ;;  %v103_v61 = vld [vmem:[#allocation2 + $0x40] sm:$0xff] }
  0x16   :  { %v4546_v27 = vand.u32 4294901760, %v2939_v19  ;;  %v4544_v31 = vand.u32 4294901760, %v2950_v23  ;;  %2306 = vmatprep.subr.mxu0 %v2929_v12  ;;  %v4540_v36 = vand.u32 4294901760, %v2960_v28  ;;  %v446_v40 = vsub.f32 %v2953_v24, %v4541_v32  ;;  %p2868_p8 = por %p2867_p7, %p2866_p6 }
  0x17   :  { %v432_v34 = vsub.f32 %v2936_v18, %v4549_v26  ;;  %v4539_v37 = vand.u32 4294901760, %v2963_v29  ;;  %2307 = vmatpush3.msra.mxu0 %v2931_v13  ;;  %v439_v38 = vsub.f32 %v2947_v22, %v4545_v30  ;;  %v4537_v41 = vand.u32 4294901760, %v2970_v33  ;;  %v98_v30 = vld [vmem:[#allocation2 + $0x18] sm:$0xff]  ;;  %v113_v26 = vld [vmem:[#allocation2 + $0x90] sm:$0xff] }
  0x18   :  { %v320_v35 = vsub.f32 %v2939_v19, %v4546_v27  ;;  %v327_v39 = vsub.f32 %v2950_v23, %v4544_v31  ;;  %2308 = vmatprep.subr.mxu0 %v2933_v14  ;;  %v334_v46 = vsub.f32 %v2960_v28, %v4540_v36  ;;  %v447_v53 = vand.u32 4294901760, %v446_v40  ;;  %v114_v31 = vld [vmem:[#allocation2 + $0x98] sm:$0xff]  ;;  %p2869_p9 = pnand %p2868_p8, %p2862_p5 }
  0x19   :  { %v433_v44 = vand.u32 4294901760, %v432_v34  ;;  %v453_v47 = vsub.f32 %v2963_v29, %v4539_v37  ;;  %2309 = vmatpush3.msra.mxu0 %v2941_v20  ;;  %v440_v51 = vand.u32 4294901760, %v439_v38  ;;  %v341_v54 = vsub.f32 %v2970_v33, %v4537_v41 }
  0x1a   :  { %v321_v45 = vand.u32 4294901760, %v320_v35  ;;  %v328_v52 = vand.u32 4294901760, %v327_v39  ;;  %2310 = vmatprep.subr.mxu0 %v2943_v21  ;;  %v335_v57 = vand.u32 4294901760, %v334_v46  ;;  %v3006_v60 = vand.u32 4294901760, %v106_v43 }
  0x1b   :  { %2348 = vmatprep.subr.mxu1 %v433_v44  ;;  %v454_v58 = vand.u32 4294901760, %v453_v47  ;;  %2311 = vmatpush3.msra.mxu0 %v2955_v25  ;;  %v342_v62 = vand.u32 4294901760, %v341_v54  ;;  %v3009_v63 = vand.u32 4294901760, %v121_v48  ;;  %v3011_v0 = vand.u32 4294901760, %v105_v49 }
  0x1c   :  { %2349 = vmatpush3.msra.mxu1 %v321_v45  ;;  %v3013_v1 = vand.u32 4294901760, %v120_v50  ;;  %v3016_v2 = vsub.f32 %v122_v42, %v3004_v59  ;;  %v3019_v3 = vsub.f32 %v106_v43, %v3006_v60  ;;  %v3021_v4 = vand.u32 4294901760, %v104_v55  ;;  %2312 = vmatprep.subr.mxu0 %v3004_v59 }
  0x1d   :  { %2350 = vmatprep.subr.mxu1 %v440_v51  ;;  %v3023_v5 = vand.u32 4294901760, %v119_v56  ;;  %v3027_v6 = vsub.f32 %v121_v48, %v3009_v63  ;;  %v3030_v9 = vsub.f32 %v105_v49, %v3011_v0  ;;  %v3035_v11 = vand.u32 4294901760, %v103_v61  ;;  %2313 = vmatpush3.msra.mxu0 %v3006_v60  ;;  %v102_v51 = vld [vmem:[#allocation2 + $0x38] sm:$0xff] }
  0x1e   :  { %2351 = vmatpush3.msra.mxu1 %v328_v52  ;;  %v3033_v10 = vsub.f32 %v120_v50, %v3013_v1  ;;  %v4536_v15 = vand.u32 4294901760, %v3016_v2  ;;  %v4535_v16 = vand.u32 4294901760, %v3019_v3  ;;  %v3041_v17 = vsub.f32 %v104_v55, %v3021_v4  ;;  %2314 = vmatprep.subr.mxu0 %v3009_v63  ;;  %v118_v50 = vld [vmem:[#allocation2 + $0xb8] sm:$0xff] }
  0x1f   :  { %2352 = vmatprep.subr.mxu1 %v447_v53  ;;  %v3044_v34 = vsub.f32 %v119_v56, %v3023_v5  ;;  %v4533_v35 = vand.u32 4294901760, %v3027_v6  ;;  %v4531_v38 = vand.u32 4294901760, %v3030_v9  ;;  %v3051_v40 = vsub.f32 %v103_v61, %v3035_v11  ;;  %2315 = vmatpush3.msra.mxu0 %v3011_v0  ;;  %v117_v56 = vld [vmem:[#allocation2 + $0xb0] sm:$0xff] }
  0x20   :  { %2353 = vmatpush3.msra.mxu1 %v335_v57  ;;  %v4530_v39 = vand.u32 4294901760, %v3033_v10  ;;  %v460_v42 = vsub.f32 %v3016_v2, %v4536_v15  ;;  %v348_v43 = vsub.f32 %v3019_v3, %v4535_v16  ;;  %v4532_v44 = vand.u32 4294901760, %v3041_v17  ;;  %2316 = vmatprep.subr.mxu0 %v3013_v1  ;;  %v101_v57 = vld [vmem:[#allocation2 + $0x30] sm:$0xff]  ;;  %v99_v15 = vld [vmem:[#allocation2 + $0x20] sm:$0xff] }
  0x21   :  { %4699 = vst [vmem:[#allocation11_spill] sm:$0xff] %v3044_v34  ;;  %4700 = vst [vmem:[#allocation12_spill] sm:$0xff] %v3051_v40  ;;  %2354 = vmatprep.subr.mxu1 %v454_v58  ;;  %v4534_v45 = vand.u32 4294901760, %v3044_v34  ;;  %v467_v46 = vsub.f32 %v3027_v6, %v4533_v35  ;;  %v355_v47 = vsub.f32 %v3030_v9, %v4531_v38  ;;  %v4538_v49 = vand.u32 4294901760, %v3051_v40  ;;  %v116_v58 = vld [vmem:[#allocation2 + $0xa8] sm:$0xff]  ;;  %v115_v38 = vld [vmem:[#allocation2 + $0xa0] sm:$0xff] }
  0x22   :  { %2355 = vmatpush3.msra.mxu1 %v342_v62  ;;  %v474_v48 = vsub.f32 %v3033_v10, %v4530_v39  ;;  %2317 = vmatpush3.msra.mxu0 %v3021_v4  ;;  %v461_v52 = vand.u32 4294901760, %v460_v42  ;;  %v349_v53 = vand.u32 4294901760, %v348_v43  ;;  %v362_v54 = vsub.f32 %v3041_v17, %v4532_v44  ;;  %v100_v43 = vld [vmem:[#allocation2 + $0x28] sm:$0xff] }
  0x23   :  { %v481_v55 = vsub.f32 %v3044_v34, %v4534_v45  ;;  %2318 = vmatprep.subr.mxu0 %v3023_v5  ;;  %v468_v61 = vand.u32 4294901760, %v467_v46  ;;  %v356_v62 = vand.u32 4294901760, %v355_v47  ;;  %v369_v42 = vsub.f32 %v3051_v40, %v4538_v49  ;;  %v95_v40 = vld [vmem:[#allocation2] sm:$0xff] }
  0x24   :  { %v475_v39 = vand.u32 4294901760, %v474_v48  ;;  %2319 = vmatpush3.msra.mxu0 %v3035_v11  ;;  %2356 = vmatprep.subr.mxu1 %v461_v52  ;;  %v363_v44 = vand.u32 4294901760, %v362_v54  ;;  %v3085_v45 = vand.u32 4294901760, %v118_v50  ;;  %v3087_v16 = vand.u32 4294901760, %v102_v51 }
  0x25   :  { %v482_v35 = vand.u32 4294901760, %v481_v55  ;;  %2357 = vmatpush3.msra.mxu1 %v349_v53  ;;  %v370_v46 = vand.u32 4294901760, %v369_v42  ;;  %v3089_v47 = vand.u32 4294901760, %v117_v56  ;;  %v3091_v48 = vand.u32 4294901760, %v101_v57 }
  0x26   :  { %v3093_v41 = vand.u32 4294901760, %v116_v58  ;;  %2358 = vmatprep.subr.mxu1 %v468_v61  ;;  %v3096_v49 = vsub.f32 %v118_v50, %v3085_v45  ;;  %v3099_v52 = vsub.f32 %v102_v51, %v3087_v16  ;;  %v3101_v54 = vand.u32 4294901760, %v100_v43  ;;  %2320 = vmatprep.subr.mxu0 %v3085_v45 }
  0x27   :  { %v3103_v55 = vand.u32 4294901760, %v115_v38  ;;  %2359 = vmatpush3.msra.mxu1 %v356_v62  ;;  %v3107_v53 = vsub.f32 %v117_v56, %v3089_v47  ;;  %v3110_v42 = vsub.f32 %v101_v57, %v3091_v48  ;;  %v3115_v50 = vand.u32 4294901760, %v99_v15  ;;  %2321 = vmatpush3.msra.mxu0 %v3087_v16 }
  0x28   :  { %4701 = vst [vmem:[#allocation13_spill] sm:$0xff] %v3096_v49  ;;  %4702 = vst [vmem:[#allocation14_spill] sm:$0xff] %v3099_v52  ;;  %v3113_v61 = vsub.f32 %v116_v58, %v3093_v41  ;;  %2360 = vmatprep.subr.mxu1 %v475_v39  ;;  %v4542_v51 = vand.u32 4294901760, %v3096_v49  ;;  %v4543_v37 = vand.u32 4294901760, %v3099_v52  ;;  %v3121_v62 = vsub.f32 %v100_v43, %v3101_v54 }
  0x29   :  { %4703 = vst [vmem:[#allocation15_spill] sm:$0xff] %v3107_v53  ;;  %4704 = vst [vmem:[#allocation16_spill] sm:$0xff] %v3110_v42  ;;  %v3124_v56 = vsub.f32 %v115_v38, %v3103_v55  ;;  %2322 = vmatprep.subr.mxu0 %v3089_v47  ;;  %2361 = vmatpush3.msra.mxu1 %v363_v44  ;;  %v4547_v57 = vand.u32 4294901760, %v3107_v53  ;;  %v4548_v58 = vand.u32 4294901760, %v3110_v42 }
  0x2a   :  { %4705 = vst [vmem:[#allocation17_spill] sm:$0xff] %v3113_v61  ;;  %4706 = vst [vmem:[#allocation18_spill] sm:$0xff] %v3121_v62  ;;  %v4554_v36 = vand.u32 4294901760, %v3113_v61  ;;  %v3131_v39 = vsub.f32 %v99_v15, %v3115_v50  ;;  %2323 = vmatpush3.msra.mxu0 %v3091_v48  ;;  %2362 = vmatprep.subr.mxu1 %v482_v35  ;;  %v488_v38 = vsub.f32 %v3096_v49, %v4542_v51  ;;  %v111_v49 = vld [vmem:[#allocation2 + $0x80] sm:$0xff] }
  0x2b   :  { %4707 = vst [vmem:[#allocation19_spill] sm:$0xff] %v3124_v56  ;;  %v376_v44 = vsub.f32 %v3099_v52, %v4543_v37  ;;  %v4561_v43 = vand.u32 4294901760, %v3121_v62  ;;  %v4564_v32 = vand.u32 4294901760, %v3124_v56  ;;  %2324 = vmatprep.subr.mxu0 %v3093_v41  ;;  %2363 = vmatpush3.msra.mxu1 %v370_v46  ;;  %v495_v15 = vsub.f32 %v3107_v53, %v4547_v57  ;;  %v112_v53 = vld [vmem:[#allocation2 + $0x88] sm:$0xff] }
  0x2c   :  { %4708 = vst [vmem:[#allocation20_spill] sm:$0xff] %v3131_v39  ;;  %v383_v35 = vsub.f32 %v3110_v42, %v4548_v58  ;;  %v502_v51 = vsub.f32 %v3113_v61, %v4554_v36  ;;  %2325 = vmatpush3.msra.mxu0 %v3101_v54  ;;  %v489_v27 = vand.u32 4294901760, %v488_v38  ;;  %v97_v42 = vld [vmem:[#allocation2 + $0x10] sm:$0xff]  ;;  %v4709_v52 = vand.u32 4294901760, %v3131_v39 }
  0x2d   :  { %v377_v46 = vand.u32 4294901760, %v376_v44  ;;  %v390_v57 = vsub.f32 %v3121_v62, %v4561_v43  ;;  %v509_v58 = vsub.f32 %v3124_v56, %v4564_v32  ;;  %2326 = vmatprep.subr.mxu0 %v3103_v55  ;;  %v496_v36 = vand.u32 4294901760, %v495_v15  ;;  %v96_v44 = vld [vmem:[#allocation2 + $0x8] sm:$0xff] }
  0x2e   :  { %v384_v37 = vand.u32 4294901760, %v383_v35  ;;  %v503_v61 = vand.u32 4294901760, %v502_v51  ;;  %v397_v38 = vsub.f32 %v3131_v39, %v4709_v52  ;;  %2327 = vmatpush3.msra.mxu0 %v3115_v50  ;;  %2364 = vmatprep.subr.mxu1 %v489_v27  ;;  %v3165_v32 = vand.u32 4294901760, %v114_v31 }
  0x2f   :  { %v391_v43 = vand.u32 4294901760, %v390_v57  ;;  %v510_v62 = vand.u32 4294901760, %v509_v58  ;;  %v3167_v56 = vand.u32 4294901760, %v98_v30  ;;  %2365 = vmatpush3.msra.mxu1 %v377_v46  ;;  %v3169_v35 = vand.u32 4294901760, %v113_v26 }
  0x30   :  { %v398_v15 = vand.u32 4294901760, %v397_v38  ;;  %v3171_v51 = vand.u32 4294901760, %v97_v42  ;;  %v3173_v34 = vand.u32 4294901760, %v112_v53  ;;  %2366 = vmatprep.subr.mxu1 %v496_v36  ;;  %v3176_v52 = vsub.f32 %v114_v31, %v3165_v32  ;;  %2328 = vmatprep.subr.mxu0 %v3165_v32 }
  0x31   :  { %4710 = vst [vmem:[#allocation21_spill] sm:$0xff] %v3167_v56  ;;  %v3179_v27 = vsub.f32 %v98_v30, %v3167_v56  ;;  %v3181_v57 = vand.u32 4294901760, %v96_v44  ;;  %v3183_v58 = vand.u32 4294901760, %v111_v49  ;;  %2367 = vmatpush3.msra.mxu1 %v384_v37  ;;  %v3187_v46 = vsub.f32 %v113_v26, %v3169_v35  ;;  %2329 = vmatpush3.msra.mxu0 %v3167_v56 }
  0x32   :  { %4711 = vst [vmem:[#allocation22_spill] sm:$0xff] %v3176_v52  ;;  %v3190_v38 = vsub.f32 %v97_v42, %v3171_v51  ;;  %v3193_v36 = vsub.f32 %v112_v53, %v3173_v34  ;;  %v3195_v31 = vand.u32 4294901760, %v95_v40  ;;  %2368 = vmatprep.subr.mxu1 %v503_v61  ;;  %v4575_v30 = vand.u32 4294901760, %v3176_v52  ;;  %2330 = vmatprep.subr.mxu0 %v3169_v35 }
  0x33   :  { %4712 = vst [vmem:[#allocation23_spill] sm:$0xff] %v3179_v27  ;;  %4713 = vst [vmem:[#allocation24_spill] sm:$0xff] %v3187_v46  ;;  %v4578_v39 = vand.u32 4294901760, %v3179_v27  ;;  %v3201_v37 = vsub.f32 %v96_v44, %v3181_v57  ;;  %v3204_v26 = vsub.f32 %v111_v49, %v3183_v58  ;;  %2369 = vmatpush3.msra.mxu1 %v391_v43  ;;  %v4581_v53 = vand.u32 4294901760, %v3187_v46 }
  0x34   :  { %4714 = vst [vmem:[#allocation25_spill] sm:$0xff] %v3190_v38  ;;  %4715 = vst [vmem:[#allocation26_spill] sm:$0xff] %v3193_v36  ;;  %v3211_v61 = vsub.f32 %v95_v40, %v3195_v31  ;;  %2331 = vmatpush3.msra.mxu0 %v3171_v51  ;;  %2370 = vmatprep.subr.mxu1 %v510_v62  ;;  %v516_v49 = vsub.f32 %v3176_v52, %v4575_v30  ;;  %v4719_v62 = vand.u32 4294901760, %v3190_v38 }
  0x35   :  { %4716 = vst [vmem:[#allocation27_spill] sm:$0xff] %v3201_v37  ;;  %4717 = vst [vmem:[#allocation28_spill] sm:$0xff] %v3204_v26  ;;  %v404_v43 = vsub.f32 %v3179_v27, %v4578_v39  ;;  %2332 = vmatprep.subr.mxu0 %v3173_v34  ;;  %2371 = vmatpush3.msra.mxu1 %v398_v15  ;;  %v523_v40 = vsub.f32 %v3187_v46, %v4581_v53  ;;  %v4720_v30 = vand.u32 4294901760, %v3193_v36 }
  0x36   :  { %4718 = vst [vmem:[#allocation29_spill] sm:$0xff] %v3211_v61  ;;  %v411_v56 = vsub.f32 %v3190_v38, %v4719_v62  ;;  %v4586_v39 = vand.u32 4294901760, %v3211_v61  ;;  %2333 = vmatpush3.msra.mxu0 %v3181_v57  ;;  %v517_v42 = vand.u32 4294901760, %v516_v49  ;;  %v4721_v15 = vand.u32 4294901760, %v3201_v37 }
  0x37   :  { %v530_v52 = vsub.f32 %v3193_v36, %v4720_v30  ;;  %v405_v44 = vand.u32 4294901760, %v404_v43  ;;  %v4722_v53 = vand.u32 4294901760, %v3204_v26  ;;  %2334 = vmatprep.subr.mxu0 %v3183_v58  ;;  %v524_v62 = vand.u32 4294901760, %v523_v40 }
  0x38   :  { %v418_v27 = vsub.f32 %v3201_v37, %v4721_v15  ;;  %v412_v38 = vand.u32 4294901760, %v411_v56  ;;  %v425_v30 = vsub.f32 %v3211_v61, %v4586_v39  ;;  %2335 = vmatpush3.msra.mxu0 %v3195_v31  ;;  %2372 = vmatprep.subr.mxu1 %v517_v42  ;;  %v30_v56 = vlaneseq }
  0x39   :  { %v537_v46 = vsub.f32 %v3204_v26, %v4722_v53  ;;  %v531_v49 = vand.u32 4294901760, %v530_v52  ;;  %2392 = vmatprep.subr.mxu0 %v2936_v18  ;;  %2373 = vmatpush3.msra.mxu1 %v405_v44  ;;  %v4728_v36 = vmov 1.0  }
  0x3a   :  { %v419_v43 = vand.u32 4294901760, %v418_v27  ;;  %2374 = vmatprep.subr.mxu1 %v524_v62  ;;  %v426_v53 = vand.u32 4294901760, %v425_v30  ;;  %v3247_v40 = vand.u32 127, %v30_v56  ;;  %v4596_v27 = vmov 1.0  }
  0x3b   :  { %v538_v15 = vand.u32 4294901760, %v537_v46  ;;  %2375 = vmatpush3.msra.mxu1 %v412_v38  ;;  %v4605_v46 = vmov 0.0  }
  0x3c   :  { %2376 = vmatprep.subr.mxu1 %v531_v49  ;;  %4723 = vst [vmem:[#allocation30_spill] sm:$0xff] %v3247_v40  ;;  %v3250_v42 = vadd.s32 128, %v3247_v40 }
  0x3d   :  { %2377 = vmatpush3.msra.mxu1 %v419_v43 }
  0x3e   :  { %2378 = vmatprep.subr.mxu1 %v538_v15 }
  0x3f   :  { %2379 = vmatpush3.msra.mxu1 %v426_v53 }
  0x40   :  { %2436 = vmatprep.subr.mxu1 %v2925_v7 }
  0x8b   :  { %v3252_v52 = vpop.permute.xlu0 %36  ;;  %v3254_v44 = vpop.permute.xlu1 %42 }
  0x8c   :  { %4724 = vst [vmem:[#allocation31_spill] sm:$0xff] %v3252_v52  ;;  %4725 = vst [vmem:[#allocation32_spill] sm:$0xff] %v3254_v44  ;;  %vm48_vm0 = vcmp.eq.s32.totalorder %v3250_v42, %v3252_v52  ;;  %vm47_vm1 = vcmp.eq.s32.totalorder %v3247_v40, %v3252_v52  ;;  %vm56_vm2 = vcmp.eq.s32.totalorder %v3250_v42, %v3254_v44 }
  0x8d   :  { %2256 = vmatprep.mubr.msk.f32.mxu1 %vm48_vm0, %v4596_v27  ;;  %v2240_v38 = vsel %vm47_vm1, 1.0, %v4605_v46  ;;  %v2249_v62 = vsel %vm56_vm2, 1.0, %v4605_v46  ;;  %v2241_v30 = vsel %vm48_vm0, 1.0, %v4605_v46  ;;  %vm55_vm3 = vcmp.eq.s32.totalorder %v3247_v40, %v3254_v44 }
  0x8e   :  { %v3278_v49 = vsub.f32 %v2240_v38, %v2240_v38  ;;  %2257 = vmatmul.mubr.msk.f32.vlgmr.msra.gmra.mxu1 %vm47_vm1, %v4596_v27  ;;  %v3284_v43 = vsub.f32 %v2241_v30, %v2241_v30  ;;  %v3289_v53 = vsub.f32 %v2249_v62, %v2249_v62  ;;  %v2248_v38 = vsel %vm55_vm3, 1.0, %v4605_v46 }
  0x8f   :  { %2437 = vmatpush3.msra.mxu1 %v2927_v8  ;;  %v3287_v15 = vpop.permute.xlu0 %39  ;;  %v3303_v62 = vpop.permute.xlu1 %45  ;;  %v3318_v52 = vsub.f32 %v2248_v38, %v2248_v38 }
  0x90   :  { %4726 = vst [vmem:[#allocation33_spill] sm:$0xff] %v3287_v15  ;;  %2438 = vmatprep.subr.mxu1 %v2929_v12  ;;  %vm52_vm4 = vcmp.eq.s32.totalorder %v3250_v42, %v3287_v15  ;;  %vm51_vm5 = vcmp.eq.s32.totalorder %v3247_v40, %v3287_v15  ;;  %v257_v56 = vand.u32 4294901760, %v3284_v43  ;;  %4727 = vst [vmem:[#allocation34_spill] sm:$0xff] %v3303_v62  ;;  %v4600_v18 = vand.u32 4294901760, %v3278_v49 }
  0x91   :  { %2439 = vmatpush3.msra.mxu1 %v2931_v13  ;;  %v2245_v30 = vsel %vm52_vm4, 1.0, %v4605_v46  ;;  %2258 = vmatprep.mubr.msk.f32.mxu1 %vm52_vm4, %v4596_v27  ;;  %v2244_v39 = vsel %vm51_vm5, 1.0, %v4605_v46  ;;  %vm60_vm6 = vcmp.eq.s32.totalorder %v3250_v42, %v3303_v62  ;;  %vm59_vm7 = vcmp.eq.s32.totalorder %v3247_v40, %v3303_v62  ;;  %v4742_v40 = vld [vmem:[#allocation22_spill] sm:$0xff] }
  0x92   :  { %v3321_v61 = vsub.f32 %v2245_v30, %v2245_v30  ;;  %2440 = vmatprep.subr.mxu1 %v2933_v14  ;;  %v3324_v26 = vsub.f32 %v2244_v39, %v2244_v39  ;;  %2259 = vmatmul.mubr.msk.f32.gmra.mxu1 %vm51_vm5, %v4596_v27  ;;  %v258_v37 = vsub.f32 %v3284_v43, %v257_v56  ;;  %v2253_v30 = vsel %vm60_vm6, 1.0, %v4605_v46 }
  0x93   :  { %2441 = vmatpush3.msra.mxu1 %v2941_v20  ;;  %2260 = vmatprep.mubr.msk.f32.mxu1 %vm56_vm2, %v4596_v27  ;;  %v264_v38 = vsub.f32 %v3278_v49, %v4600_v18  ;;  %v2252_v18 = vsel %vm59_vm7, 1.0, %v4605_v46  ;;  %v4741_v44 = vand.u32 4294901760, %v3278_v49 }
  0x94   :  { %2442 = vmatprep.subr.mxu1 %v2943_v21  ;;  %v259_v39 = vand.u32 4294901760, %v258_v37  ;;  %v4607_v27 = vand.u32 4294901760, %v3321_v61  ;;  %v4608_v20 = vand.u32 4294901760, %v3324_v26  ;;  %v3372_v21 = vsub.f32 %v2252_v18, %v2252_v18 }
  0x95   :  { %2443 = vmatpush3.msra.mxu1 %v2955_v25  ;;  %v265_v15 = vand.u32 4294901760, %v264_v38  ;;  %v3364_v38 = vsub.f32 %v2253_v30, %v2253_v30  ;;  %v4729_v30 = vand.u32 4294901760, %v3289_v53 }
  0x96   :  { %2444 = vmatprep.subr.mxu1 %v3004_v59  ;;  %260 = vmatprep.mubr.f32.mxu0 %v259_v39  ;;  %v273_v37 = vsub.f32 %v3321_v61, %v4607_v27  ;;  %v279_v46 = vsub.f32 %v3324_v26, %v4608_v20  ;;  %v4609_v39 = vand.u32 4294901760, %v3318_v52 }
  0x97   :  { %2261 = vmatmul.mubr.msk.f32.gmra.mxu1 %vm55_vm3, %v4728_v36  ;;  %266 = vmatmul.mubr.f32.vlgmr.msra.gmra.mxu0 %v265_v15  ;;  %v288_v20 = vsub.f32 %v3289_v53, %v4729_v30 }
  0x98   :  { %2445 = vmatpush3.msra.mxu1 %v3006_v60  ;;  %2393 = vmatpush3.msra.mxu0 %v2939_v19  ;;  %v274_v27 = vand.u32 4294901760, %v273_v37  ;;  %v280_v15 = vand.u32 4294901760, %v279_v46  ;;  %v294_v18 = vsub.f32 %v3318_v52, %v4609_v39  ;;  %v4613_v37 = vand.u32 4294901760, %v3364_v38 }
  0x99   :  { %2446 = vmatprep.subr.mxu1 %v3009_v63  ;;  %2394 = vmatprep.subr.mxu0 %v2947_v22  ;;  %v4612_v46 = vand.u32 4294901760, %v3372_v21  ;;  %v289_v30 = vand.u32 4294901760, %v288_v20 }
  0x9a   :  { %2447 = vmatpush3.msra.mxu1 %v3011_v0  ;;  %2262 = vmatprep.mubr.msk.f32.mxu1 %vm60_vm6, %v4728_v36  ;;  %v295_v39 = vand.u32 4294901760, %v294_v18  ;;  %v4733_v18 = vld [vmem:[#allocation21_spill] sm:$0xff] }
  0x9b   :  { %2395 = vmatpush3.msra.mxu0 %v2950_v23  ;;  %2448 = vmatprep.subr.mxu1 %v3013_v1  ;;  %v309_v62 = vsub.f32 %v3372_v21, %v4612_v46  ;;  %v4739_v46 = vld [vmem:[#allocation19_spill] sm:$0xff] }
  0x9c   :  { %275 = vmatprep.mubr.f32.mxu0 %v274_v27  ;;  %2263 = vmatmul.mubr.msk.f32.gmra.mxu1 %vm59_vm7, %v4728_v36  ;;  %v303_v27 = vsub.f32 %v3364_v38, %v4613_v37  ;;  %v4740_v37 = vld [vmem:[#allocation20_spill] sm:$0xff] }
  0x9d   :  { %2396 = vmatprep.subr.mxu0 %v2953_v24  ;;  %2449 = vmatpush3.msra.mxu1 %v3021_v4 }
  0x9e   :  { %281 = vmatmul.mubr.f32.gmra.mxu0 %v280_v15  ;;  %2450 = vmatprep.subr.mxu1 %v3023_v5  ;;  %v304_v20 = vand.u32 4294901760, %v303_v27  ;;  %v4732_v15 = vld [vmem:[#allocation13_spill] sm:$0xff]  ;;  %v4735_v27 = vld [vmem:[#allocation15_spill] sm:$0xff] }
  0x9f   :  { %2397 = vmatpush3.msra.mxu0 %v2960_v28  ;;  %833 = vmatprep.mubr.f32.mxu1 %v257_v56  ;;  %v310_v56 = vand.u32 4294901760, %v309_v62  ;;  %v4731_v62 = vld [vmem:[#allocation12_spill] sm:$0xff] }
  0xa0   :  { %2398 = vmatprep.subr.mxu0 %v2963_v29  ;;  %2451 = vmatpush3.msra.mxu1 %v3035_v11 }
  0xa1   :  { %2399 = vmatpush3.msra.mxu0 %v2970_v33  ;;  %2452 = vmatprep.subr.mxu1 %v3085_v45 }
  0xa2   :  { %290 = vmatprep.mubr.f32.mxu0 %v289_v30  ;;  %2400 = vmatprep.subr.mxu0 %v3016_v2  ;;  %v4734_v30 = vld [vmem:[#allocation14_spill] sm:$0xff] }
  0xa3   :  { %2453 = vmatpush3.msra.mxu1 %v3087_v16  ;;  %296 = vmatmul.mubr.f32.gmra.mxu0 %v295_v39  ;;  %v4730_v39 = vld [vmem:[#allocation11_spill] sm:$0xff] }
  0xa4   :  { %2401 = vmatpush3.msra.mxu0 %v3019_v3  ;;  %2454 = vmatprep.subr.mxu1 %v3089_v47 }
  0xa5   :  { %2402 = vmatprep.subr.mxu0 %v3027_v6  ;;  %2455 = vmatpush3.msra.mxu1 %v3091_v48 }
  0xa6   :  { %2403 = vmatpush3.msra.mxu0 %v3030_v9  ;;  %2456 = vmatprep.subr.mxu1 %v3093_v41 }
  0xa7   :  { %305 = vmatprep.mubr.f32.mxu0 %v304_v20  ;;  %2404 = vmatprep.subr.mxu0 %v3033_v10  ;;  %v4736_v20 = vld [vmem:[#allocation16_spill] sm:$0xff] }
  0xa8   :  { %2457 = vmatpush3.msra.mxu1 %v3101_v54  ;;  %311 = vmatmul.mubr.f32.gmra.mxu0 %v310_v56  ;;  %v4738_v56 = vld [vmem:[#allocation18_spill] sm:$0xff] }
  0xa9   :  { %2405 = vmatpush3.msra.mxu0 %v3041_v17  ;;  %2458 = vmatprep.subr.mxu1 %v3103_v55 }
  0xaa   :  { %2406 = vmatprep.subr.mxu0 %v4730_v39  ;;  %699 = vmatprep.mubr.f32.mxu0 %v3284_v43  ;;  %v4737_v43 = vld [vmem:[#allocation17_spill] sm:$0xff] }
  0xab   :  { %2459 = vmatpush3.msra.mxu1 %v3115_v50  ;;  %2407 = vmatpush3.msra.mxu0 %v4731_v62 }
  0xac   :  { %2460 = vmatprep.subr.mxu1 %v3165_v32  ;;  %2408 = vmatprep.subr.mxu0 %v4732_v15 }
  0xad   :  { %2461 = vmatpush3.msra.mxu1 %v4733_v18  ;;  %2409 = vmatpush3.msra.mxu0 %v4734_v30 }
  0xae   :  { %2462 = vmatprep.subr.mxu1 %v3169_v35  ;;  %2410 = vmatprep.subr.mxu0 %v4735_v27 }
  0xaf   :  { %2463 = vmatpush3.msra.mxu1 %v3171_v51  ;;  %2411 = vmatpush3.msra.mxu0 %v4736_v20 }
  0xb0   :  { %2464 = vmatprep.subr.mxu1 %v3173_v34  ;;  %2412 = vmatprep.subr.mxu0 %v4737_v43  ;;  %v4743_v43 = vand.u32 4294901760, %v3321_v61 }
  0xb1   :  { %2465 = vmatpush3.msra.mxu1 %v3181_v57  ;;  %2413 = vmatpush3.msra.mxu0 %v4738_v56  ;;  %v4744_v56 = vld [vmem:[#allocation23_spill] sm:$0xff] }
  0xb2   :  { %2466 = vmatprep.subr.mxu1 %v3183_v58  ;;  %2414 = vmatprep.subr.mxu0 %v4739_v46  ;;  %v4745_v46 = vld [vmem:[#allocation24_spill] sm:$0xff] }
  0xb3   :  { %2467 = vmatpush3.msra.mxu1 %v3195_v31  ;;  %2415 = vmatpush3.msra.mxu0 %v4740_v37  ;;  %v4746_v37 = vld [vmem:[#allocation25_spill] sm:$0xff] }
  0xb4   :  { %837 = vmatmul.mubr.f32.vlgmr.msra.gmra.mxu1 %v4741_v44  ;;  %2524 = vmatprep.subr.mxu1 %v2925_v7  ;;  %v4747_v44 = vand.u32 4294901760, %v3324_v26  ;;  %v4748_v7 = vld [vmem:[#allocation26_spill] sm:$0xff] }
  0xb5   :  { %2416 = vmatprep.subr.mxu0 %v4742_v40  ;;  %844 = vmatprep.mubr.f32.mxu1 %v4743_v43  ;;  %v4749_v43 = vand.u32 4294901760, %v3289_v53 }
  0xb6   :  { %2525 = vmatpush3.msra.mxu1 %v2927_v8  ;;  %2417 = vmatpush3.msra.mxu0 %v4744_v56  ;;  %v4750_v8 = vld [vmem:[#allocation9_spill] sm:$0xff]  ;;  %v4751_v56 = vld [vmem:[#allocation27_spill] sm:$0xff] }
  0xb7   :  { %2526 = vmatprep.subr.mxu1 %v2929_v12  ;;  %2418 = vmatprep.subr.mxu0 %v4745_v46  ;;  %v4752_v12 = vld [vmem:[#allocation10_spill] sm:$0xff]  ;;  %v4753_v46 = vld [vmem:[#allocation28_spill] sm:$0xff] }
  0xb8   :  { %2527 = vmatpush3.msra.mxu1 %v2931_v13  ;;  %2419 = vmatpush3.msra.mxu0 %v4746_v37  ;;  %v4754_v13 = vld [vmem:[#allocation29_spill] sm:$0xff] }
  0xb9   :  { %848 = vmatmul.mubr.f32.gmra.mxu1 %v4747_v44  ;;  %2528 = vmatprep.subr.mxu1 %v2933_v14  ;;  %v4755_v44 = vand.u32 4294901760, %v3318_v52  ;;  %v4756_v14 = vand.u32 4294901760, %v3364_v38 }
  0xba   :  { %2420 = vmatprep.subr.mxu0 %v4748_v7  ;;  %855 = vmatprep.mubr.f32.mxu1 %v4749_v43  ;;  %v4757_v43 = vld [vmem:[#allocation8_spill] sm:$0xff] }
  0xbb   :  { %2529 = vmatpush3.msra.mxu1 %v4750_v8  ;;  %2421 = vmatpush3.msra.mxu0 %v4751_v56  ;;  %v4758_v8 = vand.u32 4294901760, %v4757_v43  ;;  %v139_v43 = vld [vmem:[#allocation2 + $0x160] sm:$0xff] }
  0xbc   :  { %2530 = vmatprep.subr.mxu1 %v4752_v12  ;;  %2422 = vmatprep.subr.mxu0 %v4753_v46  ;;  %v4760_v12 = vand.u32 4294901760, %v2947_v22  ;;  %v4764_v22 = vld [vmem:[#allocation31_spill] sm:$0xff] }
  0xbd   :  { %2531 = vmatpush3.msra.mxu1 %v2955_v25  ;;  %2423 = vmatpush3.msra.mxu0 %v4754_v13  ;;  %v4759_v25 = vand.u32 4294901760, %v2939_v19  ;;  %v4763_v19 = vand.u32 4294901760, %v2953_v24  ;;  %v4766_v24 = vand.u32 4294901760, %v2963_v29 }
  0xbe   :  { %859 = vmatmul.mubr.f32.gmra.mxu1 %v4755_v44  ;;  %2532 = vmatprep.subr.mxu1 %v3004_v59  ;;  %v4761_v59 = vand.u32 4294901760, %v2950_v23  ;;  %v157_v23 = vld [vmem:[#allocation2 + $0x1f0] sm:$0xff] }
  0xbf   :  { %702 = vmatmul.mubr.f32.vlgmr.msra.gmra.mxu0 %v3278_v49  ;;  %866 = vmatprep.mubr.f32.mxu1 %v4756_v14  ;;  %v4762_v49 = vand.u32 4294901760, %v3372_v21  ;;  %v3507_v44 = vand.u32 4294901760, %v157_v23  ;;  %v155_v14 = vld [vmem:[#allocation2 + $0x1e0] sm:$0xff] }
  0xc0   :  { %2480 = vmatprep.subr.mxu0 %v4758_v8  ;;  %2533 = vmatpush3.msra.mxu1 %v3006_v60  ;;  %v158_v60 = vld [vmem:[#allocation2 + $0x1f8] sm:$0xff] }
  0xc1   :  { %708 = vmatprep.mubr.f32.mxu0 %v3321_v61  ;;  %2481 = vmatpush3.msra.mxu0 %v4759_v25  ;;  %v4767_v61 = vand.u32 4294901760, %v2970_v33  ;;  %v4771_v33 = vand.u32 4294901760, %v3019_v3  ;;  %v4776_v3 = vand.u32 4294901760, %v3030_v9  ;;  %v154_v8 = vld [vmem:[#allocation2 + $0x1d8] sm:$0xff]  ;;  %v4779_v25 = vand.u32 4294901760, %v3033_v10 }
  0xc2   :  { %2534 = vmatprep.subr.mxu1 %v3009_v63  ;;  %2482 = vmatprep.subr.mxu0 %v4760_v12  ;;  %v142_v63 = vld [vmem:[#allocation2 + $0x178] sm:$0xff]  ;;  %v4780_v12 = vand.u32 4294901760, %v3041_v17  ;;  %v3560_v10 = vand.u32 4294901760, %v139_v43 }
  0xc3   :  { %2535 = vmatpush3.msra.mxu1 %v3011_v0  ;;  %2483 = vmatpush3.msra.mxu0 %v4761_v59  ;;  %v4765_v0 = vand.u32 4294901760, %v2960_v28  ;;  %v4782_v59 = vand.u32 4294901760, %v4730_v39  ;;  %v4785_v39 = vand.u32 4294901760, %v4732_v15 }
  0xc4   :  { %870 = vmatmul.mubr.f32.gmra.mxu1 %v4762_v49  ;;  %2536 = vmatprep.subr.mxu1 %v3013_v1  ;;  %v3497_v1 = vand.u32 4294901760, %v158_v60  ;;  %v3566_v49 = vand.u32 4294901760, %v154_v8 }
  0xc5   :  { %711 = vmatmul.mubr.f32.gmra.mxu0 %v3324_v26  ;;  %2484 = vmatprep.subr.mxu0 %v4763_v19  ;;  %v141_v26 = vld [vmem:[#allocation2 + $0x170] sm:$0xff]  ;;  %v4783_v19 = vand.u32 4294901760, %v4731_v62 }
  0xc6   :  { %2537 = vmatpush3.msra.mxu1 %v3021_v4  ;;  %2272 = vmatprep.mubr.msk.f32.mxu1 %vm48_vm0, %v4728_v36  ;;  %v3502_v4 = vand.u32 4294901760, %v142_v63  ;;  %v3511_v28 = vand.u32 4294901760, %v141_v26  ;;  %v3517_v29 = vsub.f32 %v158_v60, %v3497_v1  ;;  %v153_v60 = vld [vmem:[#allocation2 + $0x1d0] sm:$0xff] }
  0xc7   :  { %717 = vmatprep.mubr.f32.mxu0 %v3289_v53  ;;  %2485 = vmatpush3.msra.mxu0 %v4765_v0  ;;  %v156_v53 = vld [vmem:[#allocation2 + $0x1e8] sm:$0xff] }
  0xc8   :  { %2538 = vmatprep.subr.mxu1 %v3023_v5  ;;  %2486 = vmatprep.subr.mxu0 %v4766_v24  ;;  %4768 = vst [vmem:[#allocation11_spill] sm:$0xff] %v3511_v28  ;;  %v4769_v5 = vand.u32 4294901760, %v3016_v2  ;;  %4770 = vst [vmem:[#allocation12_spill] sm:$0xff] %v3517_v29  ;;  %v3529_v2 = vsub.f32 %v157_v23, %v3507_v44  ;;  %v136_v24 = vld [vmem:[#allocation2 + $0x148] sm:$0xff] }
  0xc9   :  { %2539 = vmatpush3.msra.mxu1 %v3035_v11  ;;  %2487 = vmatpush3.msra.mxu0 %v4767_v61  ;;  %v3523_v11 = vsub.f32 %v142_v63, %v3502_v4  ;;  %v4787_v61 = vand.u32 4294901760, %v4734_v30  ;;  %v3607_v30 = vsub.f32 %v154_v8, %v3566_v49 }
  0xca   :  { %2540 = vmatprep.subr.mxu1 %v3085_v45  ;;  %720 = vmatmul.mubr.f32.gmra.mxu0 %v3318_v52  ;;  %v140_v45 = vld [vmem:[#allocation2 + $0x168] sm:$0xff]  ;;  %v4773_v52 = vand.u32 4294901760, %v3027_v6  ;;  %4774 = vst [vmem:[#allocation21_spill] sm:$0xff] %v3529_v2  ;;  %v4624_v6 = vand.u32 4294901760, %v3517_v29 }
  0xcb   :  { %2488 = vmatprep.subr.mxu0 %v4769_v5  ;;  %2541 = vmatpush3.msra.mxu1 %v3087_v16  ;;  %4772 = vst [vmem:[#allocation13_spill] sm:$0xff] %v3523_v11  ;;  %v3531_v16 = vand.u32 4294901760, %v156_v53  ;;  %v4623_v9 = vand.u32 4294901760, %v3523_v11  ;;  %v3598_v5 = vand.u32 4294901760, %v153_v60  ;;  %4790 = vst [vmem:[#allocation27_spill] sm:$0xff] %v3607_v30 }
  0xcc   :  { %726 = vmatprep.mubr.f32.mxu0 %v3364_v38  ;;  %2489 = vmatpush3.msra.mxu0 %v4771_v33  ;;  %v3537_v38 = vsub.f32 %v141_v26, %v3511_v28  ;;  %v1462_v63 = vsub.f32 %v3517_v29, %v4624_v6  ;;  %v152_v26 = vld [vmem:[#allocation2 + $0x1c8] sm:$0xff]  ;;  %v151_v33 = vld [vmem:[#allocation2 + $0x1c0] sm:$0xff]  ;;  %v149_v6 = vld [vmem:[#allocation2 + $0x1b0] sm:$0xff] }
  0xcd   :  { %2542 = vmatprep.subr.mxu1 %v3089_v47  ;;  %2490 = vmatprep.subr.mxu0 %v4773_v52  ;;  %4775 = vst [vmem:[#allocation14_spill] sm:$0xff] %v3531_v16  ;;  %v3542_v47 = vand.u32 4294901760, %v140_v45 }
  0xce   :  { %2543 = vmatpush3.msra.mxu1 %v3091_v48  ;;  %2491 = vmatpush3.msra.mxu0 %v4776_v3  ;;  %4777 = vst [vmem:[#allocation15_spill] sm:$0xff] %v3537_v38  ;;  %v3548_v48 = vand.u32 4294901760, %v155_v14  ;;  %v4619_v17 = vand.u32 4294901760, %v3537_v38  ;;  %v1463_v3 = vand.u32 4294901760, %v1462_v63  ;;  %v150_v63 = vld [vmem:[#allocation2 + $0x1b8] sm:$0xff] }
  0xcf   :  { %2544 = vmatprep.subr.mxu1 %v3093_v41  ;;  %729 = vmatmul.mubr.f32.gmra.mxu0 %v3372_v21  ;;  %4778 = vst [vmem:[#allocation16_spill] sm:$0xff] %v3542_v47  ;;  %v4622_v21 = vand.u32 4294901760, %v3529_v2  ;;  %v3558_v41 = vsub.f32 %v156_v53, %v3531_v16  ;;  %v3575_v23 = vsub.f32 %v140_v45, %v3542_v47  ;;  %v4789_v45 = vand.u32 4294901760, %v4735_v27 }
  0xd0   :  { %2492 = vmatprep.subr.mxu0 %v4779_v25  ;;  %2545 = vmatpush3.msra.mxu1 %v3101_v54  ;;  %v138_v54 = vld [vmem:[#allocation2 + $0x158] sm:$0xff]  ;;  %v3584_v62 = vsub.f32 %v155_v14, %v3548_v48  ;;  %v3596_v53 = vsub.f32 %v139_v43, %v3560_v10  ;;  %v4792_v14 = vand.u32 4294901760, %v4736_v20  ;;  %v3615_v43 = vand.u32 4294901760, %v152_v26  ;;  %v135_v25 = vld [vmem:[#allocation2 + $0x140] sm:$0xff] }
  0xd1   :  { %2493 = vmatpush3.msra.mxu0 %v4780_v12  ;;  %2264 = vmatprep.mubr.msk.f32.mxu0 %vm48_vm0, %v4728_v36  ;;  %4781 = vst [vmem:[#allocation22_spill] sm:$0xff] %v3558_v41  ;;  %4784 = vst [vmem:[#allocation25_spill] sm:$0xff] %v3575_v23  ;;  %v3586_v0 = vand.u32 4294901760, %v138_v54  ;;  %v4618_v15 = vand.u32 4294901760, %v3558_v41  ;;  %v3617_v27 = vand.u32 4294901760, %v136_v24  ;;  %v4793_v12 = vld [vmem:[#allocation17_spill] sm:$0xff] }
  0xd2   :  { %2546 = vmatprep.subr.mxu1 %v3103_v55  ;;  %2494 = vmatprep.subr.mxu0 %v4782_v59  ;;  %v137_v55 = vld [vmem:[#allocation2 + $0x150] sm:$0xff]  ;;  %4786 = vst [vmem:[#allocation26_spill] sm:$0xff] %v3584_v62  ;;  %4788 = vst [vmem:[#allocation9_spill] sm:$0xff] %v3596_v53  ;;  %v4794_v8 = vand.u32 4294901760, %v4793_v12  ;;  %v3626_v20 = vand.u32 4294901760, %v151_v33  ;;  %v4800_v12 = vld [vmem:[#allocation19_spill] sm:$0xff] }
  0xd3   :  { %2547 = vmatpush3.msra.mxu1 %v3115_v50  ;;  %2495 = vmatpush3.msra.mxu0 %v4783_v19  ;;  %v1350_v50 = vsub.f32 %v3523_v11, %v4623_v9  ;;  %v3609_v52 = vand.u32 4294901760, %v137_v55  ;;  %v4620_v19 = vand.u32 4294901760, %v3584_v62 }
  0xd4   :  { %2548 = vmatprep.subr.mxu1 %v3165_v32  ;;  %2496 = vmatprep.subr.mxu0 %v4785_v39  ;;  %v1469_v32 = vsub.f32 %v3529_v2, %v4622_v21  ;;  %4796 = vst [vmem:[#allocation29_spill] sm:$0xff] %v3626_v20  ;;  %v4797_v39 = vld [vmem:[#allocation18_spill] sm:$0xff] }
  0xd5   :  { %2549 = vmatpush3.msra.mxu1 %v4733_v18  ;;  %2497 = vmatpush3.msra.mxu0 %v4787_v61  ;;  %v1357_v18 = vsub.f32 %v3537_v38, %v4619_v17  ;;  %4791 = vst [vmem:[#allocation10_spill] sm:$0xff] %v3609_v52  ;;  %v1351_v59 = vand.u32 4294901760, %v1350_v50  ;;  %v4798_v61 = vand.u32 4294901760, %v4797_v39  ;;  %v4625_v50 = vand.u32 4294901760, %v3596_v53 }
  0xd6   :  { %2550 = vmatprep.subr.mxu1 %v3169_v35  ;;  %2498 = vmatprep.subr.mxu0 %v4789_v45  ;;  %v4621_v35 = vand.u32 4294901760, %v3575_v23  ;;  %v1470_v45 = vand.u32 4294901760, %v1469_v32  ;;  %v4626_v39 = vand.u32 4294901760, %v3607_v30  ;;  %v3643_v32 = vsub.f32 %v137_v55, %v3609_v52  ;;  %v4808_v55 = vld [vmem:[#allocation30_spill] sm:$0xff] }
  0xd7   :  { %2551 = vmatpush3.msra.mxu1 %v3171_v51  ;;  %2499 = vmatpush3.msra.mxu0 %v4792_v14  ;;  %v3624_v51 = vsub.f32 %v138_v54, %v3586_v0  ;;  %v3636_v14 = vsub.f32 %v153_v60, %v3598_v5  ;;  %v134_v54 = vld [vmem:[#allocation2 + $0x138] sm:$0xff]  ;;  %v3654_v60 = vsub.f32 %v152_v26, %v3615_v43  ;;  %v3691_v9 = vadd.s32 384, %v4808_v55 }
  0xd8   :  { %2552 = vmatprep.subr.mxu1 %v3173_v34  ;;  %2500 = vmatprep.subr.mxu0 %v4794_v8  ;;  %v1476_v34 = vsub.f32 %v3558_v41, %v4618_v15  ;;  %v4801_v8 = vand.u32 4294901760, %v4800_v12  ;;  %4802 = vst [vmem:[#allocation17_spill] sm:$0xff] %v3643_v32  ;;  %v4804_v15 = vld [vmem:[#allocation20_spill] sm:$0xff]  ;;  %v3659_v12 = vand.u32 4294901760, %v150_v63  ;;  %v3670_v26 = vsub.f32 %v151_v33, %v3626_v20  ;;  %v4812_v33 = vld [vmem:[#allocation23_spill] sm:$0xff] }
  0xd9   :  { %4795 = vst [vmem:[#allocation28_spill] sm:$0xff] %v3624_v51  ;;  %2553 = vmatpush3.msra.mxu1 %v3181_v57  ;;  %2501 = vmatpush3.msra.mxu0 %v4798_v61  ;;  %4799 = vst [vmem:[#allocation8_spill] sm:$0xff] %v3636_v14  ;;  %v1358_v57 = vand.u32 4294901760, %v1357_v18  ;;  %v3645_v61 = vand.u32 4294901760, %v135_v25  ;;  %v4805_v17 = vand.u32 4294901760, %v4804_v15  ;;  %v3657_v18 = vsub.f32 %v136_v24, %v3617_v27 }
  0xda   :  { %2554 = vmatprep.subr.mxu1 %v3183_v58  ;;  %2502 = vmatprep.subr.mxu0 %v4801_v8  ;;  %v1364_v58 = vsub.f32 %v3575_v23, %v4621_v35  ;;  %4806 = vst [vmem:[#allocation19_spill] sm:$0xff] %v3654_v60  ;;  %4809 = vst [vmem:[#allocation30_spill] sm:$0xff] %v3670_v26  ;;  %v3672_v15 = vand.u32 4294901760, %v134_v54  ;;  %v4810_v24 = vand.u32 4294901760, %v4742_v40  ;;  %v4811_v8 = vld [vmem:[#allocation33_spill] sm:$0xff]  ;;  %v4813_v21 = vand.u32 4294901760, %v4812_v33 }
  0xdb   :  { %4803 = vst [vmem:[#allocation18_spill] sm:$0xff] %v3645_v61  ;;  %2555 = vmatpush3.msra.mxu1 %v3195_v31  ;;  %2503 = vmatpush3.msra.mxu0 %v4805_v17  ;;  %4807 = vst [vmem:[#allocation20_spill] sm:$0xff] %v3657_v18  ;;  %v1483_v31 = vsub.f32 %v3584_v62, %v4620_v19  ;;  %v1371_v19 = vsub.f32 %v3596_v53, %v4625_v50  ;;  %v133_v50 = vld [vmem:[#allocation2 + $0x130] sm:$0xff]  ;;  %v4816_v35 = vld [vmem:[#allocation24_spill] sm:$0xff]  ;;  %v4820_v53 = vand.u32 4294901760, %v3624_v51 }
  0xdc   :  { %2273 = vmatmul.mubr.msk.f32.vlgmr.msra.gmra.mxu1 %vm47_vm1, %v4728_v36  ;;  %2612 = vmatprep.subr.mxu1 %v1463_v3  ;;  %v1477_v3 = vand.u32 4294901760, %v1476_v34  ;;  %v1490_v40 = vsub.f32 %v3607_v30, %v4626_v39  ;;  %4814 = vst [vmem:[#allocation23_spill] sm:$0xff] %v3691_v9  ;;  %v3694_v34 = vsub.f32 %v135_v25, %v3645_v61  ;;  %v1365_v33 = vand.u32 4294901760, %v1364_v58 }
  0xdd   :  { %2504 = vmatprep.subr.mxu0 %v4810_v24  ;;  %2274 = vmatprep.mubr.msk.f32.mxu1 %vm52_vm4, %v4728_v36  ;;  %v3701_v39 = vsub.f32 %v150_v63, %v3659_v12  ;;  %v148_v24 = vld [vmem:[#allocation2 + $0x1a8] sm:$0xff]  ;;  %v4819_v30 = vand.u32 4294901760, %v4746_v37  ;;  %v1484_v25 = vand.u32 4294901760, %v1483_v31  ;;  %v3710_v58 = vsub.f32 %v134_v54, %v3672_v15  ;;  %v4824_v54 = vld [vmem:[#allocation32_spill] sm:$0xff] }
  0xde   :  { %2613 = vmatpush3.msra.mxu1 %v1351_v59  ;;  %2505 = vmatpush3.msra.mxu0 %v4813_v21  ;;  %4815 = vst [vmem:[#allocation35_spill] sm:$0xff] %v3694_v34  ;;  %v4817_v59 = vand.u32 4294901760, %v4816_v35  ;;  %v1372_v63 = vand.u32 4294901760, %v1371_v19  ;;  %v4822_v37 = vand.u32 4294901760, %v3636_v14  ;;  %v3721_v31 = vand.u32 4294901760, %v133_v50 }
  0xdf   :  { %2614 = vmatprep.subr.mxu1 %v1470_v45  ;;  %4818 = vst [vmem:[#allocation24_spill] sm:$0xff] %v3701_v39  ;;  %v1378_v45 = vsub.f32 %v3624_v51, %v4820_v53  ;;  %4821 = vst [vmem:[#allocation36_spill] sm:$0xff] %v3710_v58  ;;  %v132_v53 = vld [vmem:[#allocation2 + $0x128] sm:$0xff]  ;;  %v1491_v35 = vand.u32 4294901760, %v1490_v40  ;;  %v4825_v19 = vand.u32 4294901760, %v3643_v32  ;;  %v3733_v17 = vand.u32 4294901760, %v148_v24 }
  0xe0   :  { %2506 = vmatprep.subr.mxu0 %v4817_v59  ;;  %2615 = vmatpush3.msra.mxu1 %v1358_v57  ;;  %v3719_v57 = vand.u32 4294901760, %v149_v6  ;;  %v4823_v59 = vand.u32 4294901760, %v4748_v7  ;;  %v4826_v21 = vand.u32 4294901760, %v4751_v56  ;;  %v4827_v7 = vand.u32 4294901760, %v3654_v60 }
  0xe1   :  { %2507 = vmatpush3.msra.mxu0 %v4819_v30  ;;  %2275 = vmatmul.mubr.msk.f32.gmra.mxu1 %vm51_vm5, %v4728_v36  ;;  %v1497_v30 = vsub.f32 %v3636_v14, %v4822_v37  ;;  %v4828_v14 = vand.u32 4294901760, %v3657_v18  ;;  %v4829_v37 = vand.u32 4294901760, %v4753_v46  ;;  %v4830_v56 = vand.u32 4294901760, %v3670_v26 }
  0xe2   :  { %2616 = vmatprep.subr.mxu1 %v1477_v3  ;;  %2508 = vmatprep.subr.mxu0 %v4823_v59  ;;  %v1385_v3 = vsub.f32 %v3643_v32, %v4825_v19  ;;  %v1504_v59 = vsub.f32 %v3654_v60, %v4827_v7  ;;  %v147_v19 = vld [vmem:[#allocation2 + $0x1a0] sm:$0xff]  ;;  %v3754_v60 = vand.u32 4294901760, %v132_v53  ;;  %vm50_vm8 = vcmp.eq.s32.totalorder %v3691_v9, %v4764_v22  ;;  %v145_v7 = vld [vmem:[#allocation2 + $0x190] sm:$0xff] }
  0xe3   :  { %2276 = vmatprep.mubr.msk.f32.mxu1 %vm56_vm2, %v4728_v36  ;;  %2617 = vmatpush3.msra.mxu1 %v1365_v33  ;;  %v3743_v40 = vsub.f32 %v3657_v18, %v4828_v14  ;;  %v1379_v33 = vand.u32 4294901760, %v1378_v45  ;;  %v131_v32 = vld [vmem:[#allocation2 + $0x120] sm:$0xff]  ;;  %v4831_v14 = vand.u32 4294901760, %v4754_v13  ;;  %v1498_v51 = vand.u32 4294901760, %v1497_v30  ;;  %v146_v45 = vld [vmem:[#allocation2 + $0x198] sm:$0xff] }
  0xe4   :  { %2509 = vmatpush3.msra.mxu0 %v4826_v21  ;;  %2618 = vmatprep.subr.mxu1 %v1484_v25  ;;  %v3751_v21 = vsub.f32 %v3670_v26, %v4830_v56  ;;  %v3761_v46 = vsub.f32 %v149_v6, %v3719_v57  ;;  %v3764_v25 = vsub.f32 %v133_v50, %v3721_v31  ;;  %v4834_v13 = vand.u32 4294901760, %v3694_v34  ;;  %v130_v50 = vld [vmem:[#allocation2 + $0x118] sm:$0xff] }
  0xe5   :  { %2510 = vmatprep.subr.mxu0 %v4829_v37  ;;  %2619 = vmatpush3.msra.mxu1 %v1372_v63  ;;  %v1386_v63 = vand.u32 4294901760, %v1385_v3  ;;  %v3776_v37 = vsub.f32 %v148_v24, %v3733_v17  ;;  %v3778_v6 = vand.u32 4294901760, %v147_v19  ;;  %v1505_v3 = vand.u32 4294901760, %v1504_v59 }
  0xe6   :  { %2511 = vmatpush3.msra.mxu0 %v4831_v14  ;;  %4832 = vst [vmem:[#allocation37_spill] sm:$0xff] %v3761_v46  ;;  %4833 = vst [vmem:[#allocation38_spill] sm:$0xff] %v3764_v25  ;;  %2277 = vmatmul.mubr.msk.f32.gmra.mxu1 %vm55_vm3, %v4728_v36  ;;  %v3773_v30 = vsub.f32 %v3694_v34, %v4834_v13  ;;  %v1393_v56 = vand.u32 4294901760, %v3743_v40  ;;  %v4837_v14 = vand.u32 4294901760, %v3701_v39  ;;  %v3794_v13 = vand.u32 4294901760, %v131_v32 }
  0xe7   :  { %2620 = vmatprep.subr.mxu1 %v1491_v35  ;;  %4835 = vst [vmem:[#allocation39_spill] sm:$0xff] %v3776_v37  ;;  %2265 = vmatmul.mubr.msk.f32.vlgmr.msra.gmra.mxu0 %vm47_vm1, %v4728_v36  ;;  %v4836_v35 = vld [vmem:[#allocation34_spill] sm:$0xff]  ;;  %v4839_v34 = vmov 0.0   ;;  %v4840_v59 = vand.u32 4294901760, %v3710_v58  ;;  %v3807_v18 = vsub.f32 %v132_v53, %v3754_v60  ;;  %v144_v53 = vld [vmem:[#allocation2 + $0x188] sm:$0xff]  ;;  %v3825_v38 = vsub.f32 %v147_v19, %v3778_v6 }
  0xe8   :  { %2278 = vmatprep.mubr.msk.f32.mxu1 %vm60_vm6, %v4728_v36  ;;  %v3792_v24 = vsub.f32 %v3701_v39, %v4837_v14  ;;  %4838 = vst [vmem:[#allocation40_spill] sm:$0xff] %v3794_v13  ;;  %2568 = vmatprep.subr.mxu0 %v3497_v1  ;;  %v2243_v26 = vsel %vm50_vm8, 1.0, %v4839_v34  ;;  %v3809_v14 = vand.u32 4294901760, %v146_v45  ;;  %v129_v39 = vld [vmem:[#allocation2 + $0x110] sm:$0xff]  ;;  %v1400_v23 = vand.u32 4294901760, %v3773_v30  ;;  %v143_v30 = vld [vmem:[#allocation2 + $0x180] sm:$0xff] }
  0xe9   :  { %2621 = vmatpush3.msra.mxu1 %v1379_v33  ;;  %v3804_v40 = vsub.f32 %v3710_v58, %v4840_v59  ;;  %4841 = vst [vmem:[#allocation41_spill] sm:$0xff] %v3807_v18  ;;  %2266 = vmatprep.mubr.msk.f32.mxu0 %vm52_vm4, %v4728_v36  ;;  %v1512_v33 = vand.u32 4294901760, %v3751_v21  ;;  %v3819_v58 = vand.u32 4294901760, %v130_v50  ;;  %v3827_v2 = vand.u32 4294901760, %v145_v7  ;;  %v128_v21 = vld [vmem:[#allocation2 + $0x108] sm:$0xff] }
  0xea   :  { %2569 = vmatpush3.msra.mxu0 %v3502_v4  ;;  %2622 = vmatprep.subr.mxu1 %v1498_v51  ;;  %v3830_v59 = vsub.f32 %v2243_v26, %v2243_v26  ;;  %v1519_v62 = vand.u32 4294901760, %v3792_v24  ;;  %v3834_v51 = vsub.f32 %v131_v32, %v3794_v13  ;;  %v3836_v11 = vand.u32 4294901760, %v129_v39  ;;  %v127_v32 = vld [vmem:[#allocation2 + $0x100] sm:$0xff] }
  0xeb   :  { %2570 = vmatprep.subr.mxu0 %v3507_v44  ;;  %2623 = vmatpush3.msra.mxu1 %v1386_v63  ;;  %v1407_v19 = vand.u32 4294901760, %v3804_v40  ;;  %v3845_v26 = vsub.f32 %v146_v45, %v3809_v14  ;;  %v3847_v24 = vand.u32 4294901760, %v144_v53  ;;  %v4843_v41 = vand.u32 4294901760, %v3761_v46 }
  0xec   :  { %2571 = vmatpush3.msra.mxu0 %v3511_v28  ;;  %4842 = vst [vmem:[#allocation42_spill] sm:$0xff] %v3836_v11  ;;  %2279 = vmatmul.mubr.msk.f32.gmra.mxu1 %vm59_vm7, %v4728_v36  ;;  %v4844_v40 = vand.u32 4294901760, %v3764_v25  ;;  %v3861_v45 = vsub.f32 %v130_v50, %v3819_v58  ;;  %v3863_v29 = vand.u32 4294901760, %v128_v21  ;;  %v3940_v42 = vadd.s32 256, %v4808_v55 }
  0xed   :  { %2624 = vmatprep.subr.mxu1 %v1505_v3  ;;  %2267 = vmatmul.mubr.msk.f32.gmra.mxu0 %vm51_vm5, %v4728_v36  ;;  %v1525_v3 = vsub.f32 %v3761_v46, %v4843_v41  ;;  %v3874_v46 = vsub.f32 %v145_v7, %v3827_v2  ;;  %v3888_v41 = vand.u32 4294901760, %v127_v32  ;;  %v4847_v7 = vand.u32 4294901760, %v3807_v18 }
  0xee   :  { %2572 = vmatprep.subr.mxu0 %v3531_v16  ;;  %v1413_v63 = vsub.f32 %v3764_v25, %v4844_v40  ;;  %4845 = vst [vmem:[#allocation43_spill] sm:$0xff] %v3861_v45  ;;  %2625 = vmatpush3.msra.mxu1 %v1393_v56  ;;  %v4846_v16 = vand.u32 4294901760, %v3776_v37  ;;  %v3876_v40 = vand.u32 4294901760, %v143_v30  ;;  %4853 = vst [vmem:[#allocation44_spill] sm:$0xff] %v3940_v42 }
  0xef   :  { %2280 = vmatprep.mubr.msk.f32.mxu1 %vm50_vm8, %v4728_v36  ;;  %2268 = vmatprep.mubr.msk.f32.mxu0 %vm56_vm2, %v4728_v36  ;;  %v1526_v56 = vand.u32 4294901760, %v1525_v3  ;;  %v4850_v3 = vand.u32 4294901760, %v3834_v51  ;;  %vm49_vm9 = vcmp.eq.s32.totalorder %v3940_v42, %v4764_v22  ;;  %vm54_vm10 = vcmp.eq.s32.totalorder %v3691_v9, %v4811_v8 }
  0xf0   :  { %v1532_v28 = vsub.f32 %v3776_v37, %v4846_v16  ;;  %2573 = vmatpush3.msra.mxu0 %v3542_v47  ;;  %v3886_v16 = vsub.f32 %v129_v39, %v3836_v11  ;;  %2626 = vmatprep.subr.mxu1 %v1512_v33  ;;  %v1420_v37 = vsub.f32 %v3807_v18, %v4847_v7  ;;  %v1414_v39 = vand.u32 4294901760, %v1413_v63 }
  0xf1   :  { %2574 = vmatprep.subr.mxu0 %v3548_v48  ;;  %v3896_v47 = vsub.f32 %v144_v53, %v3847_v24  ;;  %2627 = vmatpush3.msra.mxu1 %v1400_v23  ;;  %v3901_v33 = vsub.f32 %v128_v21, %v3863_v29  ;;  %v4848_v53 = vand.u32 4294901760, %v3825_v38  ;;  %v3912_v63 = vsub.f32 %v143_v30, %v3876_v40 }
  0xf2   :  { %2575 = vmatpush3.msra.mxu0 %v3560_v10  ;;  %2628 = vmatprep.subr.mxu1 %v1519_v62  ;;  %v1533_v7 = vand.u32 4294901760, %v1532_v28  ;;  %v4849_v62 = vand.u32 4294901760, %v3830_v59  ;;  %v1427_v28 = vsub.f32 %v3834_v51, %v4850_v3  ;;  %v1421_v30 = vand.u32 4294901760, %v1420_v37 }
  0xf3   :  { %2269 = vmatmul.mubr.msk.f32.gmra.mxu0 %vm55_vm3, %v4728_v36  ;;  %v1539_v23 = vsub.f32 %v3825_v38, %v4848_v53  ;;  %2576 = vmatprep.subr.mxu0 %v3566_v49  ;;  %v3923_v53 = vsub.f32 %v127_v32, %v3888_v41  ;;  %v4852_v32 = vand.u32 4294901760, %v3861_v45  ;;  %vm53_vm11 = vcmp.eq.s32.totalorder %v3940_v42, %v4811_v8  ;;  %v4864_v8 = vld [vmem:[#allocation13_spill] sm:$0xff] }
  0xf4   :  { %2629 = vmatpush3.msra.mxu1 %v1407_v19  ;;  %v1288_v21 = vsub.f32 %v3830_v59, %v4849_v62  ;;  %2270 = vmatprep.mubr.msk.f32.mxu0 %vm60_vm6, %v4728_v36  ;;  %v4851_v19 = vand.u32 4294901760, %v3845_v26  ;;  %v1428_v50 = vand.u32 4294901760, %v1427_v28  ;;  %vm58_vm12 = vcmp.eq.s32.totalorder %v3691_v9, %v4824_v54 }
  0xf5   :  { %2577 = vmatpush3.msra.mxu0 %v3586_v0  ;;  %2630 = vmatprep.subr.mxu1 %v1526_v56  ;;  %v1434_v3 = vsub.f32 %v3861_v45, %v4852_v32  ;;  %v1540_v37 = vand.u32 4294901760, %v1539_v23  ;;  %v4855_v45 = vand.u32 4294901760, %v3886_v16  ;;  %v4856_v56 = vand.u32 4294901760, %v3896_v47 }
  0xf6   :  { %v1546_v62 = vsub.f32 %v3845_v26, %v4851_v19  ;;  %2578 = vmatprep.subr.mxu0 %v3598_v5  ;;  %2631 = vmatpush3.msra.mxu1 %v1414_v39  ;;  %v4854_v19 = vand.u32 4294901760, %v3874_v46  ;;  %v1289_v32 = vand.u32 4294901760, %v1288_v21  ;;  %v4857_v21 = vand.u32 4294901760, %v3901_v33 }
  0xf7   :  { %2579 = vmatpush3.msra.mxu0 %v3609_v52  ;;  %2632 = vmatprep.subr.mxu1 %v1533_v7  ;;  %v1441_v39 = vsub.f32 %v3886_v16, %v4855_v45  ;;  %v1560_v7 = vsub.f32 %v3896_v47, %v4856_v56  ;;  %v1435_v55 = vand.u32 4294901760, %v1434_v3  ;;  %v4858_v23 = vand.u32 4294901760, %v3912_v63 }
  0xf8   :  { %v1553_v25 = vsub.f32 %v3874_v46, %v4854_v19  ;;  %2271 = vmatmul.mubr.msk.f32.gmra.mxu0 %vm59_vm7, %v4728_v36  ;;  %2580 = vmatprep.subr.mxu0 %v3615_v43  ;;  %v1547_v19 = vand.u32 4294901760, %v1546_v62  ;;  %v1448_v28 = vsub.f32 %v3901_v33, %v4857_v21  ;;  %v4859_v3 = vand.u32 4294901760, %v3923_v53 }
  0xf9   :  { %2633 = vmatpush3.msra.mxu1 %v1421_v30  ;;  %2581 = vmatpush3.msra.mxu0 %v3617_v27  ;;  %v1567_v30 = vsub.f32 %v3912_v63, %v4858_v23  ;;  %v1442_v62 = vand.u32 4294901760, %v1441_v39  ;;  %v2247_v23 = vsel %vm54_vm10, 1.0, %v4839_v34  ;;  %vm57_vm13 = vcmp.eq.s32.totalorder %v3940_v42, %v4824_v54  ;;  %v4863_v54 = vld [vmem:[#allocation12_spill] sm:$0xff] }
  0xfa   :  { %1290 = vmatprep.mubr.f32.mxu0 %v1289_v32  ;;  %2634 = vmatprep.subr.mxu1 %v1540_v37  ;;  %v1554_v45 = vand.u32 4294901760, %v1553_v25  ;;  %v1455_v56 = vsub.f32 %v3923_v53, %v4859_v3  ;;  %v1561_v37 = vand.u32 4294901760, %v1560_v7  ;;  %v1449_v25 = vand.u32 4294901760, %v1448_v28  ;;  %v4861_v3 = vld [vmem:[#allocation14_spill] sm:$0xff] }
  0xfb   :  { %2582 = vmatprep.subr.mxu0 %v3626_v20  ;;  %2635 = vmatpush3.msra.mxu1 %v1428_v50  ;;  %v2242_v50 = vsel %vm49_vm9, 1.0, %v4839_v34  ;;  %v1568_v32 = vand.u32 4294901760, %v1567_v30  ;;  %v3995_v7 = vsub.f32 %v2247_v23, %v2247_v23  ;;  %v2251_v28 = vsel %vm58_vm12, 1.0, %v4839_v34 }
  0xfc   :  { %2583 = vmatpush3.msra.mxu0 %v3645_v61  ;;  %2636 = vmatprep.subr.mxu1 %v1547_v19  ;;  %v1456_v39 = vand.u32 4294901760, %v1455_v56  ;;  %v3988_v19 = vsub.f32 %v2242_v50, %v2242_v50  ;;  %vm62_vm14 = vcmp.eq.s32.totalorder %v3691_v9, %v4836_v35  ;;  %v4036_v56 = vsub.f32 %v2251_v28, %v2251_v28  ;;  %v4862_v50 = vld [vmem:[#allocation16_spill] sm:$0xff]  ;;  %v4867_v9 = vld [vmem:[#allocation15_spill] sm:$0xff] }
  0xfd   :  { %2584 = vmatprep.subr.mxu0 %v3659_v12  ;;  %2637 = vmatpush3.msra.mxu1 %v1435_v55  ;;  %v2246_v55 = vsel %vm53_vm11, 1.0, %v4839_v34  ;;  %v4678_v30 = vand.u32 4294901760, %v3995_v7  ;;  %vm61_vm15 = vcmp.eq.s32.totalorder %v3940_v42, %v4836_v35 }
  0xfe   :  { %2585 = vmatpush3.msra.mxu0 %v3672_v15  ;;  %2638 = vmatprep.subr.mxu1 %v1554_v45  ;;  %v4677_v21 = vand.u32 4294901760, %v3988_v19  ;;  %v4024_v45 = vsub.f32 %v2246_v55, %v2246_v55 }
  0xff   :  { %2586 = vmatprep.subr.mxu0 %v3719_v57  ;;  %2639 = vmatpush3.msra.mxu1 %v1442_v62  ;;  %v4860_v62 = vld [vmem:[#allocation11_spill] sm:$0xff] }
 0x100   :  { %2587 = vmatpush3.msra.mxu0 %v3721_v31  ;;  %2640 = vmatprep.subr.mxu1 %v1561_v37  ;;  %v2250_v37 = vsel %vm57_vm13, 1.0, %v4839_v34  ;;  %v4682_v23 = vand.u32 4294901760, %v4024_v45 }
 0x101   :  { %2588 = vmatprep.subr.mxu0 %v3733_v17  ;;  %2641 = vmatpush3.msra.mxu1 %v1449_v25  ;;  %v1294_v25 = vsub.f32 %v3988_v19, %v4677_v21  ;;  %v4064_v55 = vsub.f32 %v2250_v37, %v2250_v37  ;;  %v2254_v37 = vsel %vm61_vm15, 1.0, %v4839_v34 }
 0x102   :  { %2589 = vmatpush3.msra.mxu0 %v3754_v60  ;;  %2642 = vmatprep.subr.mxu1 %v1568_v32  ;;  %v2255_v32 = vsel %vm62_vm14, 1.0, %v4839_v34  ;;  %v1309_v21 = vsub.f32 %v4024_v45, %v4682_v23  ;;  %v4091_v34 = vsub.f32 %v2254_v37, %v2254_v37 }
 0x103   :  { %2590 = vmatprep.subr.mxu0 %v3778_v6  ;;  %2643 = vmatpush3.msra.mxu1 %v1456_v39  ;;  %v1303_v39 = vsub.f32 %v3995_v7, %v4678_v30  ;;  %v1295_v28 = vand.u32 4294901760, %v1294_v25  ;;  %v4074_v30 = vsub.f32 %v2255_v32, %v2255_v32  ;;  %v4868_v37 = vand.u32 4294901760, %v4064_v55 }
 0x104   :  { %2591 = vmatpush3.msra.mxu0 %v3794_v13  ;;  %2281 = vmatmul.mubr.msk.f32.vlgmr.msra.gmra.mxu1 %vm49_vm9, %v4728_v36  ;;  %v1310_v32 = vand.u32 4294901760, %v1309_v21  ;;  %v4870_v21 = vand.u32 4294901760, %v3830_v59 }
 0x105   :  { %2700 = vmatprep.subr.mxu1 %v3497_v1  ;;  %2592 = vmatprep.subr.mxu0 %v3809_v14  ;;  %v1304_v25 = vand.u32 4294901760, %v1303_v39  ;;  %v4866_v39 = vld [vmem:[#allocation21_spill] sm:$0xff]  ;;  %v4871_v35 = vand.u32 4294901760, %v4074_v30 }
 0x106   :  { %2282 = vmatprep.mubr.msk.f32.mxu1 %vm54_vm10, %v4728_v36  ;;  %2701 = vmatpush3.msra.mxu1 %v3502_v4 }
 0x107   :  { %2593 = vmatpush3.msra.mxu0 %v3819_v58  ;;  %2702 = vmatprep.subr.mxu1 %v3507_v44  ;;  %v1333_v42 = vsub.f32 %v4074_v30, %v4871_v35 }
 0x108   :  { %2594 = vmatprep.subr.mxu0 %v3827_v2  ;;  %2703 = vmatpush3.msra.mxu1 %v4860_v62 }
 0x109   :  { %2595 = vmatpush3.msra.mxu0 %v3836_v11  ;;  %2283 = vmatmul.mubr.msk.f32.gmra.mxu1 %vm53_vm11, %v4728_v36  ;;  %v1334_v35 = vand.u32 4294901760, %v1333_v42  ;;  %v4879_v42 = vld [vmem:[#allocation19_spill] sm:$0xff] }
 0x10a   :  { %2704 = vmatprep.subr.mxu1 %v4861_v3  ;;  %2596 = vmatprep.subr.mxu0 %v3847_v24 }
 0x10b   :  { %2284 = vmatprep.mubr.msk.f32.mxu1 %vm58_vm12, %v4728_v36  ;;  %2705 = vmatpush3.msra.mxu1 %v4862_v50 }
 0x10c   :  { %2597 = vmatpush3.msra.mxu0 %v3863_v29  ;;  %2706 = vmatprep.subr.mxu1 %v3548_v48 }
 0x10d   :  { %2598 = vmatprep.subr.mxu0 %v3876_v40  ;;  %2707 = vmatpush3.msra.mxu1 %v3560_v10 }
 0x10e   :  { %2599 = vmatpush3.msra.mxu0 %v3888_v41  ;;  %2285 = vmatmul.mubr.msk.f32.gmra.mxu1 %vm57_vm13, %v4728_v36 }
 0x10f   :  { %2708 = vmatprep.subr.mxu1 %v3566_v49  ;;  %1296 = vmatmul.mubr.f32.vlgmr.msra.gmra.mxu0 %v1295_v28  ;;  %v4865_v28 = vand.u32 4294901760, %v4036_v56 }
 0x110   :  { %2286 = vmatprep.mubr.msk.f32.mxu1 %vm62_vm14, %v4728_v36  ;;  %2656 = vmatprep.subr.mxu0 %v4863_v54 }
 0x111   :  { %2709 = vmatpush3.msra.mxu1 %v3586_v0  ;;  %1305 = vmatprep.mubr.f32.mxu0 %v1304_v25  ;;  %v1318_v22 = vsub.f32 %v4036_v56, %v4865_v28  ;;  %v1324_v25 = vsub.f32 %v4064_v55, %v4868_v37  ;;  %v4869_v28 = vld [vmem:[#allocation22_spill] sm:$0xff] }
 0x112   :  { %2657 = vmatpush3.msra.mxu0 %v4864_v8  ;;  %2710 = vmatprep.subr.mxu1 %v3598_v5 }
 0x113   :  { %2658 = vmatprep.subr.mxu0 %v4866_v39  ;;  %2711 = vmatpush3.msra.mxu1 %v3609_v52  ;;  %v1319_v23 = vand.u32 4294901760, %v1318_v22  ;;  %v4692_v52 = vand.u32 4294901760, %v4091_v34  ;;  %v1325_v37 = vand.u32 4294901760, %v1324_v25  ;;  %v4874_v22 = vld [vmem:[#allocation9_spill] sm:$0xff]  ;;  %v4877_v25 = vld [vmem:[#allocation8_spill] sm:$0xff] }
 0x114   :  { %2659 = vmatpush3.msra.mxu0 %v4867_v9  ;;  %2287 = vmatmul.mubr.msk.f32.gmra.mxu1 %vm61_vm15, %v4728_v36  ;;  %v4872_v36 = vld [vmem:[#allocation25_spill] sm:$0xff] }
 0x115   :  { %2712 = vmatprep.subr.mxu1 %v3615_v43  ;;  %1311 = vmatmul.mubr.f32.gmra.mxu0 %v1310_v32  ;;  %v4873_v32 = vld [vmem:[#allocation26_spill] sm:$0xff] }
 0x116   :  { %2660 = vmatprep.subr.mxu0 %v4869_v28  ;;  %2713 = vmatpush3.msra.mxu1 %v3617_v27 }
 0x117   :  { %1863 = vmatprep.mubr.f32.mxu1 %v4870_v21  ;;  %1320 = vmatprep.mubr.f32.mxu0 %v1319_v23  ;;  %v1339_v21 = vsub.f32 %v4091_v34, %v4692_v52  ;;  %v4875_v23 = vld [vmem:[#allocation27_spill] sm:$0xff]  ;;  %v4883_v52 = vld [vmem:[#allocation24_spill] sm:$0xff] }
 0x118   :  { %2661 = vmatpush3.msra.mxu0 %v4872_v36  ;;  %2714 = vmatprep.subr.mxu1 %v3626_v20  ;;  %v4876_v20 = vld [vmem:[#allocation28_spill] sm:$0xff] }
 0x119   :  { %2662 = vmatprep.subr.mxu0 %v4873_v32  ;;  %2715 = vmatpush3.msra.mxu1 %v3645_v61  ;;  %v4878_v61 = vld [vmem:[#allocation17_spill] sm:$0xff] }
 0x11a   :  { %2663 = vmatpush3.msra.mxu0 %v4874_v22  ;;  %2716 = vmatprep.subr.mxu1 %v3659_v12  ;;  %v1340_v22 = vand.u32 4294901760, %v1339_v21  ;;  %v4882_v21 = vld [vmem:[#allocation35_spill] sm:$0xff] }
 0x11b   :  { %1326 = vmatmul.mubr.f32.gmra.mxu0 %v1325_v37  ;;  %2664 = vmatprep.subr.mxu0 %v4875_v23  ;;  %v4880_v37 = vld [vmem:[#allocation20_spill] sm:$0xff] }
 0x11c   :  { %2717 = vmatpush3.msra.mxu1 %v3672_v15  ;;  %1335 = vmatprep.mubr.f32.mxu0 %v1334_v35  ;;  %v4881_v35 = vld [vmem:[#allocation30_spill] sm:$0xff] }
 0x11d   :  { %2665 = vmatpush3.msra.mxu0 %v4876_v20  ;;  %2718 = vmatprep.subr.mxu1 %v3719_v57 }
 0x11e   :  { %2666 = vmatprep.subr.mxu0 %v4877_v25  ;;  %2719 = vmatpush3.msra.mxu1 %v3721_v31 }
 0x11f   :  { %2667 = vmatpush3.msra.mxu0 %v4878_v61  ;;  %2720 = vmatprep.subr.mxu1 %v3733_v17 }
 0x120   :  { %1341 = vmatmul.mubr.f32.gmra.mxu0 %v1340_v22  ;;  %2668 = vmatprep.subr.mxu0 %v4879_v42  ;;  %v4884_v22 = vld [vmem:[#allocation36_spill] sm:$0xff] }
 0x121   :  { %2721 = vmatpush3.msra.mxu1 %v3754_v60  ;;  %2669 = vmatpush3.msra.mxu0 %v4880_v37  ;;  %v4885_v37 = vld [vmem:[#allocation37_spill] sm:$0xff] }
 0x122   :  { %1729 = vmatprep.mubr.f32.mxu0 %v3830_v59  ;;  %2722 = vmatprep.subr.mxu1 %v3778_v6  ;;  %v4886_v59 = vld [vmem:[#allocation38_spill] sm:$0xff] }
 0x123   :  { %2670 = vmatprep.subr.mxu0 %v4881_v35  ;;  %2723 = vmatpush3.msra.mxu1 %v3794_v13  ;;  %v4887_v13 = vld [vmem:[#allocation39_spill] sm:$0xff] }
 0x124   :  { %2671 = vmatpush3.msra.mxu0 %v4882_v21  ;;  %2724 = vmatprep.subr.mxu1 %v3809_v14 }
 0x125   :  { %2672 = vmatprep.subr.mxu0 %v4883_v52  ;;  %2725 = vmatpush3.msra.mxu1 %v3819_v58 }
 0x126   :  { %2673 = vmatpush3.msra.mxu0 %v4884_v22  ;;  %2726 = vmatprep.subr.mxu1 %v3827_v2 }
 0x127   :  { %2674 = vmatprep.subr.mxu0 %v4885_v37  ;;  %2727 = vmatpush3.msra.mxu1 %v3836_v11  ;;  %v4888_v11 = vand.u32 4294901760, %v3988_v19 }
 0x128   :  { %2675 = vmatpush3.msra.mxu0 %v4886_v59  ;;  %2728 = vmatprep.subr.mxu1 %v3847_v24 }
 0x129   :  { %2676 = vmatprep.subr.mxu0 %v4887_v13  ;;  %2729 = vmatpush3.msra.mxu1 %v3863_v29  ;;  %v4889_v13 = vand.u32 4294901760, %v3995_v7 }
 0x12a   :  { %2677 = vmatpush3.msra.mxu0 %v3807_v18  ;;  %2730 = vmatprep.subr.mxu1 %v3876_v40  ;;  %v4890_v18 = vld [vmem:[#allocation43_spill] sm:$0xff] }
 0x12b   :  { %2678 = vmatprep.subr.mxu0 %v3825_v38  ;;  %2731 = vmatpush3.msra.mxu1 %v3888_v41 }
 0x12c   :  { %2679 = vmatpush3.msra.mxu0 %v3834_v51  ;;  %1867 = vmatmul.mubr.f32.vlgmr.msra.gmra.mxu1 %v4888_v11  ;;  %v4891_v11 = vand.u32 4294901760, %v4024_v45 }
 0x12d   :  { %2788 = vmatprep.subr.mxu1 %v3497_v1  ;;  %2680 = vmatprep.subr.mxu0 %v3845_v26  ;;  %v4892_v1 = vand.u32 4294901760, %v4036_v56 }
 0x12e   :  { %1874 = vmatprep.mubr.f32.mxu1 %v4889_v13  ;;  %2789 = vmatpush3.msra.mxu1 %v3502_v4  ;;  %v4893_v4 = vand.u32 4294901760, %v4064_v55  ;;  %v4895_v13 = vand.u32 4294901760, %v4863_v54  ;;  %v4900_v54 = vand.u32 4294901760, %v4091_v34 }
 0x12f   :  { %2681 = vmatpush3.msra.mxu0 %v4890_v18  ;;  %2790 = vmatprep.subr.mxu1 %v3507_v44  ;;  %v4894_v44 = vand.u32 4294901760, %v4074_v30 }
 0x130   :  { %2682 = vmatprep.subr.mxu0 %v3874_v46  ;;  %2791 = vmatpush3.msra.mxu1 %v4860_v62  ;;  %v4906_v62 = vld [vmem:[#allocation29_spill] sm:$0xff] }
 0x131   :  { %2683 = vmatpush3.msra.mxu0 %v3886_v16  ;;  %1878 = vmatmul.mubr.f32.gmra.mxu1 %v4891_v11 }
 0x132   :  { %2792 = vmatprep.subr.mxu1 %v4861_v3  ;;  %2684 = vmatprep.subr.mxu0 %v3896_v47  ;;  %v4909_v3 = vld [vmem:[#allocation9_spill] sm:$0xff] }
 0x133   :  { %1885 = vmatprep.mubr.f32.mxu1 %v4892_v1  ;;  %2793 = vmatpush3.msra.mxu1 %v4862_v50  ;;  %v4910_v50 = vand.u32 4294901760, %v4909_v3 }
 0x134   :  { %2685 = vmatpush3.msra.mxu0 %v3901_v33  ;;  %2794 = vmatprep.subr.mxu1 %v3548_v48  ;;  %v4896_v48 = vand.u32 4294901760, %v4864_v8 }
 0x135   :  { %2686 = vmatprep.subr.mxu0 %v3912_v63  ;;  %2795 = vmatpush3.msra.mxu1 %v3560_v10  ;;  %v4897_v10 = vand.u32 4294901760, %v4866_v39 }
 0x136   :  { %2687 = vmatpush3.msra.mxu0 %v3923_v53  ;;  %1889 = vmatmul.mubr.f32.gmra.mxu1 %v4893_v4 }
 0x137   :  { %2796 = vmatprep.subr.mxu1 %v3566_v49  ;;  %1732 = vmatmul.mubr.f32.vlgmr.msra.gmra.mxu0 %v3988_v19  ;;  %v4898_v49 = vld [vmem:[#allocation10_spill] sm:$0xff]  ;;  %v4899_v19 = vand.u32 4294901760, %v4867_v9  ;;  %v4905_v9 = vand.u32 4294901760, %v4872_v36  ;;  %v4912_v36 = vand.u32 4294901760, %v4876_v20  ;;  %v4916_v20 = vld [vmem:[#allocation20_spill] sm:$0xff] }
 0x138   :  { %1896 = vmatprep.mubr.f32.mxu1 %v4894_v44  ;;  %2744 = vmatprep.subr.mxu0 %v4895_v13 }
 0x139   :  { %2797 = vmatpush3.msra.mxu1 %v3586_v0  ;;  %1738 = vmatprep.mubr.f32.mxu0 %v3995_v7  ;;  %v4901_v0 = vand.u32 4294901760, %v4869_v28  ;;  %v4931_v28 = vand.u32 4294901760, %v3834_v51  ;;  %v4937_v51 = vand.u32 4294901760, %v3886_v16  ;;  %v4942_v16 = vand.u32 4294901760, %v3923_v53 }
 0x13a   :  { %2745 = vmatpush3.msra.mxu0 %v4896_v48  ;;  %2798 = vmatprep.subr.mxu1 %v3598_v5  ;;  %v4902_v5 = vmov 1.0  }
 0x13b   :  { %2746 = vmatprep.subr.mxu0 %v4897_v10  ;;  %2799 = vmatpush3.msra.mxu1 %v4898_v49 }
 0x13c   :  { %2747 = vmatpush3.msra.mxu0 %v4899_v19  ;;  %1900 = vmatmul.mubr.f32.gmra.mxu1 %v4900_v54 }
 0x13d   :  { %2800 = vmatprep.subr.mxu1 %v3615_v43  ;;  %1741 = vmatmul.mubr.f32.gmra.mxu0 %v4024_v45  ;;  %v4907_v43 = vand.u32 4294901760, %v4873_v32  ;;  %v4908_v45 = vld [vmem:[#allocation18_spill] sm:$0xff] }
 0x13e   :  { %2748 = vmatprep.subr.mxu0 %v4901_v0  ;;  %2801 = vmatpush3.msra.mxu1 %v3617_v27  ;;  %v4911_v27 = vand.u32 4294901760, %v4875_v23 }
 0x13f   :  { %2296 = vmatprep.mubr.msk.f32.mxu1 %vm50_vm8, %v4902_v5  ;;  %1747 = vmatprep.mubr.f32.mxu0 %v4036_v56  ;;  %v4913_v56 = vand.u32 4294901760, %v4877_v25 }
 0x140   :  { %2749 = vmatpush3.msra.mxu0 %v4905_v9  ;;  %2802 = vmatprep.subr.mxu1 %v4906_v62 }
 0x141   :  { %2750 = vmatprep.subr.mxu0 %v4907_v43  ;;  %2803 = vmatpush3.msra.mxu1 %v4908_v45 }
 0x142   :  { %2751 = vmatpush3.msra.mxu0 %v4910_v50  ;;  %2804 = vmatprep.subr.mxu1 %v3659_v12  ;;  %v4914_v12 = vand.u32 4294901760, %v4878_v61  ;;  %v4918_v61 = vand.u32 4294901760, %v4881_v35 }
 0x143   :  { %1750 = vmatmul.mubr.f32.gmra.mxu0 %v4064_v55  ;;  %2752 = vmatprep.subr.mxu0 %v4911_v27  ;;  %v4924_v55 = vld [vmem:[#allocation42_spill] sm:$0xff] }
 0x144   :  { %2805 = vmatpush3.msra.mxu1 %v3672_v15  ;;  %1756 = vmatprep.mubr.f32.mxu0 %v4074_v30  ;;  %v4915_v15 = vand.u32 4294901760, %v4879_v42  ;;  %v4917_v30 = vand.u32 4294901760, %v4916_v20 }
 0x145   :  { %2753 = vmatpush3.msra.mxu0 %v4912_v36  ;;  %2806 = vmatprep.subr.mxu1 %v3719_v57  ;;  %v4920_v57 = vand.u32 4294901760, %v4882_v21 }
 0x146   :  { %2754 = vmatprep.subr.mxu0 %v4913_v56  ;;  %2807 = vmatpush3.msra.mxu1 %v3721_v31  ;;  %v4922_v31 = vand.u32 4294901760, %v4884_v22 }
 0x147   :  { %2755 = vmatpush3.msra.mxu0 %v4914_v12  ;;  %2808 = vmatprep.subr.mxu1 %v3733_v17  ;;  %v4919_v17 = vld [vmem:[#allocation40_spill] sm:$0xff] }
 0x148   :  { %1759 = vmatmul.mubr.f32.gmra.mxu0 %v4091_v34  ;;  %2756 = vmatprep.subr.mxu0 %v4915_v15  ;;  %v4925_v34 = vand.u32 4294901760, %v4886_v59 }
 0x149   :  { %2809 = vmatpush3.msra.mxu1 %v3754_v60  ;;  %2757 = vmatpush3.msra.mxu0 %v4917_v30  ;;  %v4921_v60 = vand.u32 4294901760, %v4883_v52 }
 0x14a   :  { %2288 = vmatprep.mubr.msk.f32.mxu0 %vm50_vm8, %v4902_v5  ;;  %2810 = vmatprep.subr.mxu1 %v3778_v6  ;;  %v4923_v6 = vand.u32 4294901760, %v4885_v37 }
 0x14b   :  { %2758 = vmatprep.subr.mxu0 %v4918_v61  ;;  %2811 = vmatpush3.msra.mxu1 %v4919_v17 }
 0x14c   :  { %2759 = vmatpush3.msra.mxu0 %v4920_v57  ;;  %2812 = vmatprep.subr.mxu1 %v3809_v14  ;;  %v4926_v14 = vld [vmem:[#allocation39_spill] sm:$0xff] }
 0x14d   :  { %2760 = vmatprep.subr.mxu0 %v4921_v60  ;;  %2813 = vmatpush3.msra.mxu1 %v3819_v58  ;;  %v4927_v52 = vand.u32 4294901760, %v4926_v14  ;;  %v4928_v58 = vld [vmem:[#allocation41_spill] sm:$0xff] }
 0x14e   :  { %2761 = vmatpush3.msra.mxu0 %v4922_v31  ;;  %2814 = vmatprep.subr.mxu1 %v3827_v2  ;;  %v4929_v39 = vand.u32 4294901760, %v4928_v58  ;;  %v4930_v2 = vand.u32 4294901760, %v3825_v38  ;;  %v4935_v38 = vand.u32 4294901760, %v4890_v18  ;;  %v4940_v18 = vand.u32 4294901760, %v3901_v33  ;;  %v4347_v33 = vpop.f32.mrf.mxu1 }
 0x14f   :  { %2762 = vmatprep.subr.mxu0 %v4923_v6  ;;  %2815 = vmatpush3.msra.mxu1 %v4924_v55 }
 0x150   :  { %2763 = vmatpush3.msra.mxu0 %v4925_v34  ;;  %2816 = vmatprep.subr.mxu1 %v3847_v24 }
 0x151   :  { %2764 = vmatprep.subr.mxu0 %v4927_v52  ;;  %2817 = vmatpush3.msra.mxu1 %v3863_v29  ;;  %v4933_v29 = vand.u32 4294901760, %v3845_v26  ;;  %v4938_v26 = vand.u32 4294901760, %v3896_v47 }
 0x152   :  { %2765 = vmatpush3.msra.mxu0 %v4929_v39  ;;  %2818 = vmatprep.subr.mxu1 %v3876_v40 }
 0x153   :  { %2766 = vmatprep.subr.mxu0 %v4930_v2  ;;  %2819 = vmatpush3.msra.mxu1 %v3888_v41  ;;  %v4936_v41 = vand.u32 4294901760, %v3874_v46  ;;  %v4941_v46 = vand.u32 4294901760, %v3912_v63  ;;  %v4349_v63 = vpop.f32.mrf.mxu1 }
 0x154   :  { %2767 = vmatpush3.msra.mxu0 %v4931_v28  ;;  %2297 = vmatmul.mubr.msk.f32.vlgmr.msra.gmra.mxu1 %vm49_vm9, %v4902_v5 }
 0x155   :  { %2768 = vmatprep.subr.mxu0 %v4933_v29  ;;  %2298 = vmatprep.mubr.msk.f32.mxu1 %vm54_vm10, %v4902_v5  ;;  %v4353_v23 = vpop.f32.mrf.mxu1 }
 0x156   :  { %2769 = vmatpush3.msra.mxu0 %v4935_v38 }
 0x157   :  { %2770 = vmatprep.subr.mxu0 %v4936_v41  ;;  %v4351_v53 = vpop.f32.mrf.mxu0  ;;  %v4357_v42 = vpop.f32.mrf.mxu1 }
 0x158   :  { %2771 = vmatpush3.msra.mxu0 %v4937_v51  ;;  %2299 = vmatmul.mubr.msk.f32.gmra.mxu1 %vm53_vm11, %v4902_v5 }
 0x159   :  { %2772 = vmatprep.subr.mxu0 %v4938_v26  ;;  %2300 = vmatprep.mubr.msk.f32.mxu1 %vm58_vm12, %v4902_v5  ;;  %v4355_v25 = vpop.f32.mrf.mxu0  ;;  %v4361_v35 = vpop.f32.mrf.mxu1 }
 0x15a   :  { %2773 = vmatpush3.msra.mxu0 %v4940_v18 }
 0x15b   :  { %2774 = vmatprep.subr.mxu0 %v4941_v46  ;;  %v4365_v22 = vpop.f32.mrf.mxu1 }
 0x15c   :  { %2775 = vmatpush3.msra.mxu0 %v4942_v16  ;;  %2301 = vmatmul.mubr.msk.f32.gmra.mxu1 %vm57_vm13, %v4902_v5 }
 0x15d   :  { %2289 = vmatmul.mubr.msk.f32.vlgmr.msra.gmra.mxu0 %vm49_vm9, %v4902_v5  ;;  %2302 = vmatprep.mubr.msk.f32.mxu1 %vm62_vm14, %v4902_v5  ;;  %v4369_v11 = vpop.f32.mrf.mxu1 }
 0x15e   :  { %2290 = vmatprep.mubr.msk.f32.mxu0 %vm54_vm10, %v4902_v5  ;;  %v4359_v37 = vpop.f32.mrf.mxu0 }
 0x15f   :  { %v4373_v4 = vpop.f32.mrf.mxu1 }
 0x160   :  { %2303 = vmatmul.mubr.msk.f32.gmra.mxu1 %vm61_vm15, %v4902_v5  ;;  %v4363_v21 = vpop.f32.mrf.mxu0 }
 0x161   :  { %2291 = vmatmul.mubr.msk.f32.gmra.mxu0 %vm53_vm11, %v4902_v5 }
 0x162   :  { %2292 = vmatprep.mubr.msk.f32.mxu0 %vm58_vm12, %v4902_v5 }
 0x163   :  { %v4367_v59 = vpop.f32.mrf.mxu0 }
 0x165   :  { %2293 = vmatmul.mubr.msk.f32.gmra.mxu0 %vm57_vm13, %v4902_v5  ;;  %v4371_v1 = vpop.f32.mrf.mxu0 }
 0x166   :  { %2294 = vmatprep.mubr.msk.f32.mxu0 %vm62_vm14, %v4902_v5 }
 0x168   :  { %v4377_v13 = vpop.f32.mrf.mxu0 }
 0x169   :  { %2295 = vmatmul.mubr.msk.f32.gmra.mxu0 %vm61_vm15, %v4902_v5 }
 0x16a   :  { %v4381_v10 = vpop.f32.mrf.mxu0 }
 0x174   :  { %v4375_v44 = vpop.f32.mrf.mxu1 }
 0x176   :  { %v4379_v48 = vpop.f32.mrf.mxu1 }
 0x179   :  { %v4383_v49 = vpop.f32.mrf.mxu1 }
 0x17b   :  { %v4385_v54 = vpop.f32.mrf.mxu1 }
 0x17e   :  { %v4387_v5 = vpop.f32.mrf.mxu1 }
 0x17f   :  { %v2424_v19 = vpop.f32.mrf.mxu0 }
 0x180   :  { %v4389_v7 = vpop.f32.mrf.mxu1 }
 0x181   :  { %v2425_v0 = vpop.f32.mrf.mxu0 }
 0x184   :  { %v4391_v62 = vpop.f32.mrf.mxu1 }
 0x185   :  { %v2427_v8 = vpop.f32.mrf.mxu0 }
 0x186   :  { %v4393_v45 = vpop.f32.mrf.mxu1 }
 0x187   :  { %v2428_v9 = vpop.f32.mrf.mxu0 }
 0x18a   :  { %v2430_v43 = vpop.f32.mrf.mxu0 }
 0x18c   :  { %v2431_v3 = vpop.f32.mrf.mxu0 }
 0x18f   :  { %v4397_v27 = vpop.f32.mrf.mxu0 }
 0x191   :  { %v4401_v56 = vpop.f32.mrf.mxu0 }
 0x19c   :  { %v4395_v50 = vpop.f32.mrf.mxu1 }
 0x19e   :  { %v4399_v36 = vpop.f32.mrf.mxu1 }
 0x1a1   :  { %v4403_v12 = vpop.f32.mrf.mxu1 }
 0x1a3   :  { %v4405_v20 = vpop.f32.mrf.mxu1 }
 0x1a6   :  { %v4407_v61 = vpop.f32.mrf.mxu1 }
 0x1a7   :  { %v2512_v15 = vpop.f32.mrf.mxu0  ;;  %4944 = vst [vmem:[#allocation11_spill] sm:$0xff] %v4407_v61 }
 0x1a8   :  { %v4409_v57 = vpop.f32.mrf.mxu1 }
 0x1a9   :  { %v2513_v30 = vpop.f32.mrf.mxu0  ;;  %4945 = vst [vmem:[#allocation14_spill] sm:$0xff] %v4409_v57 }
 0x1ac   :  { %v4411_v31 = vpop.f32.mrf.mxu1 }
 0x1ad   :  { %v2515_v17 = vpop.f32.mrf.mxu0  ;;  %4946 = vst [vmem:[#allocation16_spill] sm:$0xff] %v4411_v31 }
 0x1ae   :  { %v4415_v55 = vpop.f32.mrf.mxu1 }
 0x1af   :  { %v2516_v60 = vpop.f32.mrf.mxu0  ;;  %4947 = vst [vmem:[#allocation12_spill] sm:$0xff] %v4415_v55 }
 0x1b3   :  { %v4413_v6 = vpop.f32.mrf.mxu0 }
 0x1b5   :  { %v4417_v34 = vpop.f32.mrf.mxu0 }
 0x1b8   :  { %v4421_v52 = vpop.f32.mrf.mxu0 }
 0x1ba   :  { %v4425_v39 = vpop.f32.mrf.mxu0 }
 0x1c4   :  { %v4419_v14 = vpop.f32.mrf.mxu1 }
 0x1c6   :  { %v4423_v58 = vpop.f32.mrf.mxu1 }
 0x1c9   :  { %v4427_v2 = vpop.f32.mrf.mxu1 }
 0x1ca   :  { %4948 = vst [vmem:[#allocation13_spill] sm:$0xff] %v4427_v2  ;;  %v2338_v2 = vadd.f32 %v4355_v25, %v4351_v53  ;;  %v2470_v25 = vadd.f32 %v4379_v48, %v4375_v44  ;;  %v2435_v44 = vadd.f32 %v4401_v56, %v4397_v27  ;;  %v2561_v27 = vadd.f32 %v4405_v20, %v4403_v12 }
 0x1cb   :  { %v4429_v24 = vpop.f32.mrf.mxu1 }
 0x1cc   :  { %4949 = vst [vmem:[#allocation21_spill] sm:$0xff] %v4429_v24 }
 0x1ce   :  { %v4431_v32 = vpop.f32.mrf.mxu1 }
 0x1cf   :  { %v2600_v28 = vpop.f32.mrf.mxu0  ;;  %4950 = vst [vmem:[#allocation15_spill] sm:$0xff] %v4431_v32 }
 0x1d0   :  { %v4433_v41 = vpop.f32.mrf.mxu1 }
 0x1d1   :  { %v2601_v29 = vpop.f32.mrf.mxu0  ;;  %4951 = vst [vmem:[#allocation22_spill] sm:$0xff] %v4433_v41 }
 0x1d4   :  { %v4435_v26 = vpop.f32.mrf.mxu1 }
 0x1d5   :  { %v2603_v38 = vpop.f32.mrf.mxu0  ;;  %4952 = vst [vmem:[#allocation25_spill] sm:$0xff] %v4435_v26 }
 0x1d6   :  { %v4439_v18 = vpop.f32.mrf.mxu1 }
 0x1d7   :  { %v2604_v51 = vpop.f32.mrf.mxu0  ;;  %4954 = vst [vmem:[#allocation27_spill] sm:$0xff] %v4439_v18  ;;  %v2382_v18 = vadd.f32 %v4349_v63, %v4347_v33  ;;  %v2344_v33 = vadd.f32 %v4371_v1, %v4367_v59  ;;  %v2388_v63 = vadd.f32 %v4365_v22, %v4361_v35  ;;  %v2517_v59 = vadd.f32 %v2516_v60, %v2515_v17 }
 0x1d8   :  { %v2605_v56 = vadd.f32 %v2604_v51, %v2603_v38  ;;  %v2479_v60 = vadd.f32 %v4393_v45, %v4391_v62 }
 0x1d9   :  { %v559_v22 = vadd.f32 %v2388_v63, %v2344_v33 }
 0x1db   :  { %v4437_v40 = vpop.f32.mrf.mxu0 }
 0x1dc   :  { %4953 = vst [vmem:[#allocation26_spill] sm:$0xff] %v4437_v40  ;;  %v2429_v40 = vadd.f32 %v2428_v9, %v2427_v8  ;;  %v2473_v8 = vadd.f32 %v4385_v54, %v4383_v49  ;;  %v2476_v54 = vadd.f32 %v4389_v7, %v4387_v5 }
 0x1dd   :  { %v4441_v46 = vpop.f32.mrf.mxu0 }
 0x1de   :  { %4955 = vst [vmem:[#allocation28_spill] sm:$0xff] %v4441_v46  ;;  %v2426_v46 = vadd.f32 %v2425_v0, %v2424_v19  ;;  %v2432_v19 = vadd.f32 %v2431_v3, %v2430_v43 }
 0x1e0   :  { %v4445_v47 = vpop.f32.mrf.mxu0  ;;  %v722_v43 = vadd.f32 %v2432_v19, %v559_v22 }
 0x1e1   :  { %4957 = vst [vmem:[#allocation17_spill] sm:$0xff] %v4445_v47 }
 0x1e2   :  { %v4449_v31 = vpop.f32.mrf.mxu0 }
 0x1e3   :  { %4959 = vst [vmem:[#allocation30_spill] sm:$0xff] %v4449_v31  ;;  %v545_v31 = vadd.f32 %v2382_v18, %v2338_v2  ;;  %v4964_v51 = vld [vmem:[#allocation26_spill] sm:$0xff] }
 0x1ec   :  { %v4443_v16 = vpop.f32.mrf.mxu1 }
 0x1ed   :  { %4956 = vst [vmem:[#allocation8_spill] sm:$0xff] %v4443_v16  ;;  %v2341_v16 = vadd.f32 %v4363_v21, %v4359_v37  ;;  %v2514_v37 = vadd.f32 %v2513_v30, %v2512_v15  ;;  %v2520_v15 = vadd.f32 %v4417_v34, %v4413_v6  ;;  %v2646_v6 = vadd.f32 %v4423_v58, %v4419_v14  ;;  %v4968_v58 = vld [vmem:[#allocation16_spill] sm:$0xff] }
 0x1ee   :  { %v4447_v55 = vpop.f32.mrf.mxu1 }
 0x1ef   :  { %4958 = vst [vmem:[#allocation19_spill] sm:$0xff] %v4447_v55 }
 0x1f1   :  { %v4451_v32 = vpop.f32.mrf.mxu1 }
 0x1f2   :  { %4960 = vst [vmem:[#allocation35_spill] sm:$0xff] %v4451_v32  ;;  %v2385_v32 = vadd.f32 %v4357_v42, %v4353_v23  ;;  %v2347_v23 = vadd.f32 %v4381_v10, %v4377_v13  ;;  %v2391_v42 = vadd.f32 %v4373_v4, %v4369_v11  ;;  %v2558_v13 = vadd.f32 %v4399_v36, %v4395_v50 }
 0x1f3   :  { %v4453_v24 = vpop.f32.mrf.mxu1  ;;  %v2602_v10 = vadd.f32 %v2601_v29, %v2600_v28  ;;  %v861_v50 = vadd.f32 %v2476_v54, %v722_v43  ;;  %v4962_v29 = vld [vmem:[#allocation11_spill] sm:$0xff]  ;;  %v4975_v43 = vld [vmem:[#allocation22_spill] sm:$0xff] }
 0x1f4   :  { %4961 = vst [vmem:[#allocation24_spill] sm:$0xff] %v4453_v24  ;;  %v704_v24 = vadd.f32 %v2426_v46, %v545_v31  ;;  %v552_v57 = vadd.f32 %v2385_v32, %v2341_v16  ;;  %v566_v3 = vadd.f32 %v2391_v42, %v2347_v23  ;;  %v2523_v31 = vadd.f32 %v4425_v39, %v4421_v52  ;;  %v4963_v32 = vld [vmem:[#allocation14_spill] sm:$0xff]  ;;  %v4966_v52 = vld [vmem:[#allocation13_spill] sm:$0xff] }
 0x1f5   :  { %v1054_v28 = vadd.f32 %v2520_v15, %v861_v50  ;;  %v2564_v38 = vadd.f32 %v4963_v32, %v4962_v29  ;;  %v4967_v39 = vld [vmem:[#allocation21_spill] sm:$0xff]  ;;  %v4971_v23 = vld [vmem:[#allocation30_spill] sm:$0xff] }
 0x1f6   :  { %v4461_v47 = vpop.f32.mrf.mxu1  ;;  %v713_v21 = vadd.f32 %v2429_v40, %v552_v57  ;;  %v839_v0 = vadd.f32 %v2470_v25, %v704_v24  ;;  %v731_v17 = vadd.f32 %v2435_v44, %v566_v3  ;;  %v4965_v40 = vld [vmem:[#allocation28_spill] sm:$0xff]  ;;  %v2649_v46 = vadd.f32 %v4967_v39, %v4966_v52 }
 0x1f7   :  { %v2688_v41 = vpop.f32.mrf.mxu0  ;;  %v2608_v62 = vadd.f32 %v4965_v40, %v4964_v51  ;;  %v1179_v25 = vadd.f32 %v2564_v38, %v1054_v28 }
 0x1f8   :  { %v4465_v61 = vpop.f32.mrf.mxu1  ;;  %v1040_v9 = vadd.f32 %v2514_v37, %v839_v0  ;;  %v850_v48 = vadd.f32 %v2473_v8, %v713_v21  ;;  %v872_v24 = vadd.f32 %v2479_v60, %v731_v17  ;;  %v4970_v0 = vld [vmem:[#allocation17_spill] sm:$0xff]  ;;  %v4972_v8 = vld [vmem:[#allocation8_spill] sm:$0xff] }
 0x1f9   :  { %v2689_v26 = vpop.f32.mrf.mxu0  ;;  %v1328_v19 = vadd.f32 %v2608_v62, %v1179_v25  ;;  %v2611_v42 = vadd.f32 %v4971_v23, %v4970_v0  ;;  %v4976_v54 = vld [vmem:[#allocation35_spill] sm:$0xff]  ;;  %v4978_v60 = vld [vmem:[#allocation25_spill] sm:$0xff]  ;;  %v2740_v32 = vadd.f32 %v4465_v61, %v4461_v47 }
 0x1fa   :  { %v1047_v11 = vadd.f32 %v2517_v59, %v850_v48  ;;  %v1165_v30 = vadd.f32 %v2558_v13, %v1040_v9  ;;  %v2690_v34 = vadd.f32 %v2689_v26, %v2688_v41  ;;  %v1061_v18 = vadd.f32 %v2523_v31, %v872_v24  ;;  %v4969_v41 = vld [vmem:[#allocation12_spill] sm:$0xff]  ;;  %v4973_v59 = vld [vmem:[#allocation19_spill] sm:$0xff] }
 0x1fb   :  { %v2567_v26 = vadd.f32 %v4969_v41, %v4968_v58  ;;  %v2734_v22 = vadd.f32 %v4973_v59, %v4972_v8  ;;  %v4977_v15 = vld [vmem:[#allocation24_spill] sm:$0xff]  ;;  %v4979_v31 = vld [vmem:[#allocation27_spill] sm:$0xff] }
 0x1fc   :  { %v4479_v1 = vpop.f32.mrf.mxu1  ;;  %v1298_v36 = vadd.f32 %v2602_v10, %v1165_v30  ;;  %v1172_v2 = vadd.f32 %v2561_v27, %v1047_v11  ;;  %v2737_v30 = vadd.f32 %v4977_v15, %v4976_v54 }
 0x1fd   :  { %v2691_v55 = vpop.f32.mrf.mxu0  ;;  %v1186_v9 = vadd.f32 %v2567_v26, %v1061_v18 }
 0x1fe   :  { %v4485_v4 = vpop.f32.mrf.mxu1  ;;  %v1313_v12 = vadd.f32 %v2605_v56, %v1172_v2  ;;  %v1575_v45 = vadd.f32 %v2646_v6, %v1298_v36  ;;  %v2655_v2 = vadd.f32 %v4979_v31, %v4978_v60 }
 0x1ff   :  { %v2692_v53 = vpop.f32.mrf.mxu0  ;;  %v1343_v27 = vadd.f32 %v2611_v42, %v1186_v9 }
 0x200   :  { %v2693_v16 = vadd.f32 %v2692_v53, %v2691_v55  ;;  %v1734_v14 = vadd.f32 %v2690_v34, %v1575_v45  ;;  %v1582_v37 = vadd.f32 %v2649_v46, %v1313_v12  ;;  %v4974_v53 = vld [vmem:[#allocation15_spill] sm:$0xff] }
 0x201   :  { %v2652_v13 = vadd.f32 %v4975_v43, %v4974_v53  ;;  %v1596_v38 = vadd.f32 %v2655_v2, %v1343_v27 }
 0x202   :  { %v1743_v44 = vadd.f32 %v2693_v16, %v1582_v37  ;;  %v1869_v3 = vadd.f32 %v2734_v22, %v1734_v14 }
 0x203   :  { %v2694_v35 = vpop.f32.mrf.mxu0  ;;  %v1589_v56 = vadd.f32 %v2652_v13, %v1328_v19 }
 0x204   :  { %v1880_v6 = vadd.f32 %v2737_v30, %v1743_v44 }
 0x205   :  { %v2695_v49 = vpop.f32.mrf.mxu0 }
 0x206   :  { %v2696_v10 = vadd.f32 %v2695_v49, %v2694_v35 }
 0x208   :  { %v2697_v5 = vpop.f32.mrf.mxu0  ;;  %v1752_v24 = vadd.f32 %v2696_v10, %v1589_v56 }
 0x20a   :  { %v2698_v33 = vpop.f32.mrf.mxu0  ;;  %v1891_v18 = vadd.f32 %v2740_v32, %v1752_v24 }
 0x20b   :  { %v2699_v12 = vadd.f32 %v2698_v33, %v2697_v5  ;;  %v2743_v5 = vadd.f32 %v4485_v4, %v4479_v1 }
 0x20d   :  { %v1761_v62 = vadd.f32 %v2699_v12, %v1596_v38 }
 0x20f   :  { %v1902_v47 = vadd.f32 %v2743_v5, %v1761_v62 }
 0x214   :  { %v2820_v57 = vpop.f32.mrf.mxu1 }
 0x216   :  { %v2821_v7 = vpop.f32.mrf.mxu1 }
 0x217   :  { %v2822_v50 = vadd.f32 %v2821_v7, %v2820_v57 }
 0x218   :  { %v2823_v20 = vpop.f32.mrf.mxu1 }
 0x21a   :  { %v2824_v63 = vpop.f32.mrf.mxu1 }
 0x21b   :  { %v2825_v51 = vadd.f32 %v2824_v63, %v2823_v20 }
 0x21c   :  { %v2826_v48 = vpop.f32.mrf.mxu1 }
 0x21d   :  { %v2776_v21 = vpop.f32.mrf.mxu0 }
 0x21e   :  { %v2827_v28 = vpop.f32.mrf.mxu1 }
 0x21f   :  { %v2777_v55 = vpop.f32.mrf.mxu0  ;;  %v2828_v46 = vadd.f32 %v2827_v28, %v2826_v48 }
 0x220   :  { %v2778_v11 = vadd.f32 %v2777_v55, %v2776_v21  ;;  %v2829_v57 = vpop.f32.mrf.mxu1 }
 0x221   :  { %v2779_v17 = vpop.f32.mrf.mxu0 }
 0x222   :  { %v2070_v36 = vadd.f32 %v2778_v11, %v1869_v3  ;;  %v2830_v33 = vpop.f32.mrf.mxu1 }
 0x223   :  { %v2780_v34 = vpop.f32.mrf.mxu0  ;;  %v2831_v63 = vadd.f32 %v2830_v33, %v2829_v57 }
 0x224   :  { %v2195_v29 = vadd.f32 %v2822_v50, %v2070_v36  ;;  %v2781_v35 = vadd.f32 %v2780_v34, %v2779_v17 }
 0x225   :  { %v2782_v49 = vpop.f32.mrf.mxu0 }
 0x226   :  { %2219 = vst [vmem:[#allocation5] sm:$0xff] %v2195_v29  ;;  %v2077_v40 = vadd.f32 %v2781_v35, %v1880_v6 }
 0x227   :  { %v2783_v7 = vpop.f32.mrf.mxu0 }
 0x228   :  { %v2202_v45 = vadd.f32 %v2825_v51, %v2077_v40  ;;  %v2784_v52 = vadd.f32 %v2783_v7, %v2782_v49 }
 0x229   :  { %v2785_v39 = vpop.f32.mrf.mxu0 }
 0x22a   :  { %2220 = vst [vmem:[#allocation5 + $0x8] sm:$0xff] %v2202_v45  ;;  %v2084_v16 = vadd.f32 %v2784_v52, %v1891_v18 }
 0x22b   :  { %v2786_v25 = vpop.f32.mrf.mxu0 }
 0x22c   :  { %v2209_v61 = vadd.f32 %v2828_v46, %v2084_v16  ;;  %v2787_v20 = vadd.f32 %v2786_v25, %v2785_v39 }
 0x22e   :  { %2221 = vst [vmem:[#allocation5 + $0x10] sm:$0xff] %v2209_v61  ;;  %v2091_v14 = vadd.f32 %v2787_v20, %v1902_v47 }
 0x230   :  { %v2216_v58 = vadd.f32 %v2831_v63, %v2091_v14 }
 0x232   :  { %2222 = vst [vmem:[#allocation5 + $0x18] sm:$0xff] %v2216_v58 }
 0x233   :  { %2872 = shalt.err (!%p2869_p9)
}
 0x234   :  { %2234 = dma.vmem_to_hbm [thread:$0]  %s2229_s23, 512, %s4529_s2, [#allocation4], %s2886_s12, %s2886_s12, %s2887_s13  }
 0x235   :  { %2883 = dma.done.wait [#allocation4], 512  }
 0x236   :  { %2884 = vsyncadd [#allocation4], 4294966784 }
 0x237   :  { %2238 = vsyncpa [#allocation3], 1 }
 0x238   :  { %2239 = vsyncpa [#allocation4], 1 }

</bundles_post_ra>
